<compile_context>
chip_gen: v7x
topology: tpu7x:2x2x1
jax: 0.10.0
libtpu: 0.0.40
codegen_flags: <defaults>
</compile_context>

<pallas_src>
import functools

import jax
import jax.numpy as jnp
from jax.experimental import pallas as pl
from jax.experimental.pallas import tpu as pltpu


def _round_up8(n):
    return (n + 7) // 8 * 8


def _slab_layout(input_size, hidden_size):
    """Row offsets of each parameter inside the packed (rows, 4H) f32 slab.

    Every offset is a multiple of 8 so in-kernel static slices start on a
    sublane-tile boundary (clean views, no shuffles).
    Layout (rows x 4H lanes):
      [r_wih : r_wih+I ]  w_ih^T   (I, 4H)
      [r_whh : r_whh+H ]  w_hh^T   (H, 4H)
      [r_b            ]   b_ih+b_hh (1, 4H)
      [r_wfc : r_wfc+H ]  w_fc^T   (H, A)   zero-padded to 4H lanes
      [r_bfc          ]   b_fc     (1, A)   zero-padded to 4H lanes
    """
    r_wih = 0
    r_whh = r_wih + _round_up8(input_size)
    r_b = r_whh + _round_up8(hidden_size)
    r_wfc = r_b + 8
    r_bfc = r_wfc + _round_up8(hidden_size)
    rows = r_bfc + 8
    return r_wih, r_whh, r_b, r_wfc, r_bfc, rows


def lstm_fc_softmax_kernel(x_ref, p_ref, out_ref):
    """Full forward: LSTM recurrence + final Linear + Softmax.

    x_ref:   (B, T, I)   batch-first input (as handed to nn.LSTM)
    p_ref:   (rows, 4H)  packed parameter slab (see _slab_layout)
    out_ref: (B, A)      softmax probabilities
    """
    B, T, I = x_ref.shape
    A = out_ref.shape[1]
    H = p_ref.shape[1] // 4
    r_wih, r_whh, r_b, r_wfc, r_bfc, _ = _slab_layout(I, H)
    hp = jax.lax.Precision.HIGHEST

    # Static, sublane-aligned views into the single packed parameter slab.
    wih = p_ref[r_wih:r_wih + I, :]          # (I, 4H)
    whh = p_ref[r_whh:r_whh + H, :]          # (H, 4H) register-resident below
    b = p_ref[r_b:r_b + 1, :]                # (1, 4H) folded b_ih + b_hh
    wfc = p_ref[r_wfc:r_wfc + H, 0:A]        # (H, A)
    bfc = p_ref[r_bfc:r_bfc + 1, 0:A]        # (1, A)

    # Hoisted input projection + bias: ONE matmul for all timesteps, off the
    # serial critical path.  (B*T, I) @ (I, 4H) -> (B*T, 4H) -> (B, T, 4H).
    x2d = x_ref[...].reshape(B * T, I)
    xz = (jnp.dot(x2d, wih, preferred_element_type=jnp.float32, precision=hp)
          + b).reshape(B, T, 4 * H)

    h = jnp.zeros((B, H), jnp.float32)
    c = jnp.zeros((B, H), jnp.float32)

    # Fully unrolled static time loop: only h @ whh sits on the per-step chain.
    for t in range(T):
        z = xz[:, t, :] + jnp.dot(h, whh,
                                  preferred_element_type=jnp.float32,
                                  precision=hp)            # (B, 4H)
        # Lane-dense transcendentals: sigmoid(z) and tanh(z) are independent
        # (back-to-back EUP issues); only tanh(c) is strictly dependent.
        # PyTorch gate order: i, f, g, o.
        sig = jax.nn.sigmoid(z)
        tnh = jnp.tanh(z)
        i_g = sig[:, 0 * H:1 * H]
        f_g = sig[:, 1 * H:2 * H]
        g_g = tnh[:, 2 * H:3 * H]
        o_g = sig[:, 3 * H:4 * H]
        c = f_g * c + i_g * g_g
        h = o_g * jnp.tanh(c)

    # fc on last timestep's hidden state, then softmax(dim=1).
    logits = (jnp.dot(h, wfc, preferred_element_type=jnp.float32, precision=hp)
              + bfc)                                        # (B, A)
    m = jnp.max(logits, axis=-1, keepdims=True)
    e = jnp.exp(logits - m)
    out_ref[...] = e / jnp.sum(e, axis=-1, keepdims=True)


def prepare_params(params):
    """Pack / pre-transpose / bias-fold parameters ONCE, outside the call path.

    Returns a single (rows, 4H) f32 slab -> one input DMA instead of five.
    """
    w_ih = jnp.asarray(params["w_ih"], jnp.float32)        # (4H, I)
    w_hh = jnp.asarray(params["w_hh"], jnp.float32)        # (4H, H)
    b = (params["b_ih"] + params["b_hh"]).astype(jnp.float32)  # (4H,)
    w_fc = jnp.asarray(params["w_fc"], jnp.float32)        # (A, H)
    b_fc = jnp.asarray(params["b_fc"], jnp.float32)        # (A,)

    four_h, input_size = w_ih.shape
    hidden = w_hh.shape[1]
    assets = w_fc.shape[0]
    assert four_h == 4 * hidden and assets <= four_h

    r_wih, r_whh, r_b, r_wfc, r_bfc, rows = _slab_layout(input_size, hidden)
    slab = jnp.zeros((rows, four_h), jnp.float32)
    slab = slab.at[r_wih:r_wih + input_size, :].set(w_ih.T)
    slab = slab.at[r_whh:r_whh + hidden, :].set(w_hh.T)
    slab = slab.at[r_b, :].set(b)
    slab = slab.at[r_wfc:r_wfc + hidden, :assets].set(w_fc.T)
    slab = slab.at[r_bfc, :assets].set(b_fc)
    return slab


@functools.partial(jax.jit, static_argnames=("assets_num",))
def lstm_forward(x_bti, param_slab, *, assets_num):
    """x_bti: (B, T, I) batch-first input (matches nn.LSTM(batch_first=True))."""
    B, _T, _I = x_bti.shape
    vmem = pl.BlockSpec(memory_space=pltpu.MemorySpace.VMEM)
    return pl.pallas_call(
        lstm_fc_softmax_kernel,
        out_shape=jax.ShapeDtypeStruct((B, assets_num), jnp.float32),
        in_specs=[vmem, vmem],
        out_specs=vmem,
    )(x_bti.astype(jnp.float32), param_slab)


def lstm_reference(x_bti, params):
    """Pure-JAX f32 reference replicating the PyTorch forward semantics."""
    B, T, _A = x_bti.shape
    H = params["w_hh"].shape[1]
    hp = jax.lax.Precision.HIGHEST
    w_ih, w_hh = params["w_ih"], params["w_hh"]
    b = params["b_ih"] + params["b_hh"]
    h = jnp.zeros((B, H), jnp.float32)
    c = jnp.zeros((B, H), jnp.float32)
    for t in range(T):
        z = (jnp.dot(x_bti[:, t, :], w_ih.T, precision=hp)
             + jnp.dot(h, w_hh.T, precision=hp) + b)
        i_g = jax.nn.sigmoid(z[:, 0 * H:1 * H])
        f_g = jax.nn.sigmoid(z[:, 1 * H:2 * H])
        g_g = jnp.tanh(z[:, 2 * H:3 * H])
        o_g = jax.nn.sigmoid(z[:, 3 * H:4 * H])
        c = f_g * c + i_g * g_g
        h = o_g * jnp.tanh(c)
    logits = jnp.dot(h, params["w_fc"].T, precision=hp) + params["b_fc"]
    return jax.nn.softmax(logits, axis=1)


def init_params(key, assets_num, hidden_size):
    """Deterministic init with PyTorch-style U(-1/sqrt(H), 1/sqrt(H))."""
    ks = jax.random.split(key, 6)
    s = 1.0 / jnp.sqrt(hidden_size)
    u = lambda k, shape: jax.random.uniform(k, shape, jnp.float32, -s, s)
    return {
        "w_ih": u(ks[0], (4 * hidden_size, assets_num)),
        "w_hh": u(ks[1], (4 * hidden_size, hidden_size)),
        "b_ih": u(ks[2], (4 * hidden_size,)),
        "b_hh": u(ks[3], (4 * hidden_size,)),
        "w_fc": u(ks[4], (assets_num, hidden_size)),
        "b_fc": u(ks[5], (assets_num,)),
    }


if __name__ == "__main__":
    B, T, ASSETS, HIDDEN = 2, 8, 4, 32

    key = jax.random.PRNGKey(0)
    k_x, k_p = jax.random.split(key)
    x = jax.random.normal(k_x, (B, T, ASSETS), jnp.float32)  # (batch, seq, assets)
    params = init_params(k_p, ASSETS, HIDDEN)
    slab = prepare_params(params)        # packed once, cached outside the call

    out = jax.block_until_ready(lstm_forward(x, slab, assets_num=ASSETS))
    ref = lstm_reference(x, params)

    assert out.shape == (B, ASSETS)
    assert jnp.allclose(jnp.sum(out, axis=1), 1.0, atol=1e-5)
    assert jnp.allclose(out, ref, atol=1e-5, rtol=1e-5)
    print("KERNEL_OK")
</pallas_src>

<mosaic_0001>
module attributes {stable_mosaic.version = 11 : i64} {
  func.func @lstm_fc_softmax_kernel(%arg0: memref<2x8x4xf32, #tpu.memory_space<vmem>>, %arg1: memref<88x128xf32, #tpu.memory_space<vmem>>, %arg2: memref<2x4xf32, #tpu.memory_space<vmem>>) attributes {dimension_semantics = [], scalar_prefetch = 0 : i64, scratch_operands = 0 : i64, tpu.core_type = #tpu.core_type<tc>} {
    %c0 = arith.constant 0 : index
    %c0_0 = arith.constant 0 : index
    %0 = vector.load %arg1[%c0, %c0_0] : memref<88x128xf32, #tpu.memory_space<vmem>>, vector<4x128xf32>
    %c8 = arith.constant 8 : index
    %c0_1 = arith.constant 0 : index
    %1 = vector.load %arg1[%c8, %c0_1] : memref<88x128xf32, #tpu.memory_space<vmem>>, vector<32x128xf32>
    %c40 = arith.constant 40 : index
    %c0_2 = arith.constant 0 : index
    %2 = vector.load %arg1[%c40, %c0_2] : memref<88x128xf32, #tpu.memory_space<vmem>>, vector<1x128xf32>
    %c48 = arith.constant 48 : index
    %c0_3 = arith.constant 0 : index
    %3 = vector.load %arg1[%c48, %c0_3] : memref<88x128xf32, #tpu.memory_space<vmem>>, vector<32x4xf32>
    %c80 = arith.constant 80 : index
    %c0_4 = arith.constant 0 : index
    %4 = vector.load %arg1[%c80, %c0_4] : memref<88x128xf32, #tpu.memory_space<vmem>>, vector<1x4xf32>
    %c0_5 = arith.constant 0 : index
    %c0_6 = arith.constant 0 : index
    %c0_7 = arith.constant 0 : index
    %5 = vector.load %arg0[%c0_5, %c0_6, %c0_7] : memref<2x8x4xf32, #tpu.memory_space<vmem>>, vector<2x8x4xf32>
    %6 = vector.shape_cast %5 : vector<2x8x4xf32> to vector<16x4xf32>
    %cst = arith.constant dense<0.000000e+00> : vector<16x128xf32>
    %7 = tpu.matmul %6, %0, %cst {dimension_numbers = #tpu.dot_dimension_numbers<[1], [0], [0], [1], [0, 0, 1, 1], [], []>, precision = #tpu.contract_precision<fp32>} : vector<16x4xf32>, vector<4x128xf32>, vector<16x128xf32> -> vector<16x128xf32>
    %8 = vector.broadcast %2 : vector<1x128xf32> to vector<16x128xf32>
    %9 = arith.addf %7, %8 : vector<16x128xf32>
    %10 = vector.shape_cast %9 : vector<16x128xf32> to vector<2x8x128xf32>
    %cst_8 = arith.constant 0.000000e+00 : f32
    %11 = vector.broadcast %cst_8 : f32 to vector<2x32xf32>
    %cst_9 = arith.constant 0.000000e+00 : f32
    %12 = vector.broadcast %cst_9 : f32 to vector<2x32xf32>
    %13 = vector.extract_strided_slice %10 {offsets = [0, 0, 0], sizes = [2, 1, 128], strides = [1, 1, 1]} : vector<2x8x128xf32> to vector<2x1x128xf32>
    %14 = vector.shape_cast %13 : vector<2x1x128xf32> to vector<2x128xf32>
    %cst_10 = arith.constant dense<0.000000e+00> : vector<2x128xf32>
    %15 = tpu.matmul %11, %1, %cst_10 {dimension_numbers = #tpu.dot_dimension_numbers<[1], [0], [0], [1], [0, 0, 1, 1], [], []>, precision = #tpu.contract_precision<fp32>} : vector<2x32xf32>, vector<32x128xf32>, vector<2x128xf32> -> vector<2x128xf32>
    %16 = arith.addf %14, %15 : vector<2x128xf32>
    %17 = arith.negf %16 : vector<2x128xf32>
    %18 = math.exp %17 : vector<2x128xf32>
    %cst_11 = arith.constant 1.000000e+00 : f32
    %19 = vector.broadcast %cst_11 : f32 to vector<2x128xf32>
    %20 = arith.addf %19, %18 : vector<2x128xf32>
    %21 = arith.divf %19, %20 : vector<2x128xf32>
    %22 = math.tanh %16 : vector<2x128xf32>
    %23 = vector.extract_strided_slice %21 {offsets = [0, 0], sizes = [2, 32], strides = [1, 1]} : vector<2x128xf32> to vector<2x32xf32>
    %24 = vector.extract_strided_slice %21 {offsets = [0, 32], sizes = [2, 32], strides = [1, 1]} : vector<2x128xf32> to vector<2x32xf32>
    %25 = vector.extract_strided_slice %22 {offsets = [0, 64], sizes = [2, 32], strides = [1, 1]} : vector<2x128xf32> to vector<2x32xf32>
    %26 = vector.extract_strided_slice %21 {offsets = [0, 96], sizes = [2, 32], strides = [1, 1]} : vector<2x128xf32> to vector<2x32xf32>
    %27 = arith.mulf %24, %12 : vector<2x32xf32>
    %28 = arith.mulf %23, %25 : vector<2x32xf32>
    %29 = arith.addf %27, %28 : vector<2x32xf32>
    %30 = math.tanh %29 : vector<2x32xf32>
    %31 = arith.mulf %26, %30 : vector<2x32xf32>
    %32 = vector.extract_strided_slice %10 {offsets = [0, 1, 0], sizes = [2, 1, 128], strides = [1, 1, 1]} : vector<2x8x128xf32> to vector<2x1x128xf32>
    %33 = vector.shape_cast %32 : vector<2x1x128xf32> to vector<2x128xf32>
    %cst_12 = arith.constant dense<0.000000e+00> : vector<2x128xf32>
    %34 = tpu.matmul %31, %1, %cst_12 {dimension_numbers = #tpu.dot_dimension_numbers<[1], [0], [0], [1], [0, 0, 1, 1], [], []>, precision = #tpu.contract_precision<fp32>} : vector<2x32xf32>, vector<32x128xf32>, vector<2x128xf32> -> vector<2x128xf32>
    %35 = arith.addf %33, %34 : vector<2x128xf32>
    %36 = arith.negf %35 : vector<2x128xf32>
    %37 = math.exp %36 : vector<2x128xf32>
    %cst_13 = arith.constant 1.000000e+00 : f32
    %38 = vector.broadcast %cst_13 : f32 to vector<2x128xf32>
    %39 = arith.addf %38, %37 : vector<2x128xf32>
    %40 = arith.divf %38, %39 : vector<2x128xf32>
    %41 = math.tanh %35 : vector<2x128xf32>
    %42 = vector.extract_strided_slice %40 {offsets = [0, 0], sizes = [2, 32], strides = [1, 1]} : vector<2x128xf32> to vector<2x32xf32>
    %43 = vector.extract_strided_slice %40 {offsets = [0, 32], sizes = [2, 32], strides = [1, 1]} : vector<2x128xf32> to vector<2x32xf32>
    %44 = vector.extract_strided_slice %41 {offsets = [0, 64], sizes = [2, 32], strides = [1, 1]} : vector<2x128xf32> to vector<2x32xf32>
    %45 = vector.extract_strided_slice %40 {offsets = [0, 96], sizes = [2, 32], strides = [1, 1]} : vector<2x128xf32> to vector<2x32xf32>
    %46 = arith.mulf %43, %29 : vector<2x32xf32>
    %47 = arith.mulf %42, %44 : vector<2x32xf32>
    %48 = arith.addf %46, %47 : vector<2x32xf32>
    %49 = math.tanh %48 : vector<2x32xf32>
    %50 = arith.mulf %45, %49 : vector<2x32xf32>
    %51 = vector.extract_strided_slice %10 {offsets = [0, 2, 0], sizes = [2, 1, 128], strides = [1, 1, 1]} : vector<2x8x128xf32> to vector<2x1x128xf32>
    %52 = vector.shape_cast %51 : vector<2x1x128xf32> to vector<2x128xf32>
    %cst_14 = arith.constant dense<0.000000e+00> : vector<2x128xf32>
    %53 = tpu.matmul %50, %1, %cst_14 {dimension_numbers = #tpu.dot_dimension_numbers<[1], [0], [0], [1], [0, 0, 1, 1], [], []>, precision = #tpu.contract_precision<fp32>} : vector<2x32xf32>, vector<32x128xf32>, vector<2x128xf32> -> vector<2x128xf32>
    %54 = arith.addf %52, %53 : vector<2x128xf32>
    %55 = arith.negf %54 : vector<2x128xf32>
    %56 = math.exp %55 : vector<2x128xf32>
    %cst_15 = arith.constant 1.000000e+00 : f32
    %57 = vector.broadcast %cst_15 : f32 to vector<2x128xf32>
    %58 = arith.addf %57, %56 : vector<2x128xf32>
    %59 = arith.divf %57, %58 : vector<2x128xf32>
    %60 = math.tanh %54 : vector<2x128xf32>
    %61 = vector.extract_strided_slice %59 {offsets = [0, 0], sizes = [2, 32], strides = [1, 1]} : vector<2x128xf32> to vector<2x32xf32>
    %62 = vector.extract_strided_slice %59 {offsets = [0, 32], sizes = [2, 32], strides = [1, 1]} : vector<2x128xf32> to vector<2x32xf32>
    %63 = vector.extract_strided_slice %60 {offsets = [0, 64], sizes = [2, 32], strides = [1, 1]} : vector<2x128xf32> to vector<2x32xf32>
    %64 = vector.extract_strided_slice %59 {offsets = [0, 96], sizes = [2, 32], strides = [1, 1]} : vector<2x128xf32> to vector<2x32xf32>
    %65 = arith.mulf %62, %48 : vector<2x32xf32>
    %66 = arith.mulf %61, %63 : vector<2x32xf32>
    %67 = arith.addf %65, %66 : vector<2x32xf32>
    %68 = math.tanh %67 : vector<2x32xf32>
    %69 = arith.mulf %64, %68 : vector<2x32xf32>
    %70 = vector.extract_strided_slice %10 {offsets = [0, 3, 0], sizes = [2, 1, 128], strides = [1, 1, 1]} : vector<2x8x128xf32> to vector<2x1x128xf32>
    %71 = vector.shape_cast %70 : vector<2x1x128xf32> to vector<2x128xf32>
    %cst_16 = arith.constant dense<0.000000e+00> : vector<2x128xf32>
    %72 = tpu.matmul %69, %1, %cst_16 {dimension_numbers = #tpu.dot_dimension_numbers<[1], [0], [0], [1], [0, 0, 1, 1], [], []>, precision = #tpu.contract_precision<fp32>} : vector<2x32xf32>, vector<32x128xf32>, vector<2x128xf32> -> vector<2x128xf32>
    %73 = arith.addf %71, %72 : vector<2x128xf32>
    %74 = arith.negf %73 : vector<2x128xf32>
    %75 = math.exp %74 : vector<2x128xf32>
    %cst_17 = arith.constant 1.000000e+00 : f32
    %76 = vector.broadcast %cst_17 : f32 to vector<2x128xf32>
    %77 = arith.addf %76, %75 : vector<2x128xf32>
    %78 = arith.divf %76, %77 : vector<2x128xf32>
    %79 = math.tanh %73 : vector<2x128xf32>
    %80 = vector.extract_strided_slice %78 {offsets = [0, 0], sizes = [2, 32], strides = [1, 1]} : vector<2x128xf32> to vector<2x32xf32>
    %81 = vector.extract_strided_slice %78 {offsets = [0, 32], sizes = [2, 32], strides = [1, 1]} : vector<2x128xf32> to vector<2x32xf32>
    %82 = vector.extract_strided_slice %79 {offsets = [0, 64], sizes = [2, 32], strides = [1, 1]} : vector<2x128xf32> to vector<2x32xf32>
    %83 = vector.extract_strided_slice %78 {offsets = [0, 96], sizes = [2, 32], strides = [1, 1]} : vector<2x128xf32> to vector<2x32xf32>
    %84 = arith.mulf %81, %67 : vector<2x32xf32>
    %85 = arith.mulf %80, %82 : vector<2x32xf32>
    %86 = arith.addf %84, %85 : vector<2x32xf32>
    %87 = math.tanh %86 : vector<2x32xf32>
    %88 = arith.mulf %83, %87 : vector<2x32xf32>
    %89 = vector.extract_strided_slice %10 {offsets = [0, 4, 0], sizes = [2, 1, 128], strides = [1, 1, 1]} : vector<2x8x128xf32> to vector<2x1x128xf32>
    %90 = vector.shape_cast %89 : vector<2x1x128xf32> to vector<2x128xf32>
    %cst_18 = arith.constant dense<0.000000e+00> : vector<2x128xf32>
    %91 = tpu.matmul %88, %1, %cst_18 {dimension_numbers = #tpu.dot_dimension_numbers<[1], [0], [0], [1], [0, 0, 1, 1], [], []>, precision = #tpu.contract_precision<fp32>} : vector<2x32xf32>, vector<32x128xf32>, vector<2x128xf32> -> vector<2x128xf32>
    %92 = arith.addf %90, %91 : vector<2x128xf32>
    %93 = arith.negf %92 : vector<2x128xf32>
    %94 = math.exp %93 : vector<2x128xf32>
    %cst_19 = arith.constant 1.000000e+00 : f32
    %95 = vector.broadcast %cst_19 : f32 to vector<2x128xf32>
    %96 = arith.addf %95, %94 : vector<2x128xf32>
    %97 = arith.divf %95, %96 : vector<2x128xf32>
    %98 = math.tanh %92 : vector<2x128xf32>
    %99 = vector.extract_strided_slice %97 {offsets = [0, 0], sizes = [2, 32], strides = [1, 1]} : vector<2x128xf32> to vector<2x32xf32>
    %100 = vector.extract_strided_slice %97 {offsets = [0, 32], sizes = [2, 32], strides = [1, 1]} : vector<2x128xf32> to vector<2x32xf32>
    %101 = vector.extract_strided_slice %98 {offsets = [0, 64], sizes = [2, 32], strides = [1, 1]} : vector<2x128xf32> to vector<2x32xf32>
    %102 = vector.extract_strided_slice %97 {offsets = [0, 96], sizes = [2, 32], strides = [1, 1]} : vector<2x128xf32> to vector<2x32xf32>
    %103 = arith.mulf %100, %86 : vector<2x32xf32>
    %104 = arith.mulf %99, %101 : vector<2x32xf32>
    %105 = arith.addf %103, %104 : vector<2x32xf32>
    %106 = math.tanh %105 : vector<2x32xf32>
    %107 = arith.mulf %102, %106 : vector<2x32xf32>
    %108 = vector.extract_strided_slice %10 {offsets = [0, 5, 0], sizes = [2, 1, 128], strides = [1, 1, 1]} : vector<2x8x128xf32> to vector<2x1x128xf32>
    %109 = vector.shape_cast %108 : vector<2x1x128xf32> to vector<2x128xf32>
    %cst_20 = arith.constant dense<0.000000e+00> : vector<2x128xf32>
    %110 = tpu.matmul %107, %1, %cst_20 {dimension_numbers = #tpu.dot_dimension_numbers<[1], [0], [0], [1], [0, 0, 1, 1], [], []>, precision = #tpu.contract_precision<fp32>} : vector<2x32xf32>, vector<32x128xf32>, vector<2x128xf32> -> vector<2x128xf32>
    %111 = arith.addf %109, %110 : vector<2x128xf32>
    %112 = arith.negf %111 : vector<2x128xf32>
    %113 = math.exp %112 : vector<2x128xf32>
    %cst_21 = arith.constant 1.000000e+00 : f32
    %114 = vector.broadcast %cst_21 : f32 to vector<2x128xf32>
    %115 = arith.addf %114, %113 : vector<2x128xf32>
    %116 = arith.divf %114, %115 : vector<2x128xf32>
    %117 = math.tanh %111 : vector<2x128xf32>
    %118 = vector.extract_strided_slice %116 {offsets = [0, 0], sizes = [2, 32], strides = [1, 1]} : vector<2x128xf32> to vector<2x32xf32>
    %119 = vector.extract_strided_slice %116 {offsets = [0, 32], sizes = [2, 32], strides = [1, 1]} : vector<2x128xf32> to vector<2x32xf32>
    %120 = vector.extract_strided_slice %117 {offsets = [0, 64], sizes = [2, 32], strides = [1, 1]} : vector<2x128xf32> to vector<2x32xf32>
    %121 = vector.extract_strided_slice %116 {offsets = [0, 96], sizes = [2, 32], strides = [1, 1]} : vector<2x128xf32> to vector<2x32xf32>
    %122 = arith.mulf %119, %105 : vector<2x32xf32>
    %123 = arith.mulf %118, %120 : vector<2x32xf32>
    %124 = arith.addf %122, %123 : vector<2x32xf32>
    %125 = math.tanh %124 : vector<2x32xf32>
    %126 = arith.mulf %121, %125 : vector<2x32xf32>
    %127 = vector.extract_strided_slice %10 {offsets = [0, 6, 0], sizes = [2, 1, 128], strides = [1, 1, 1]} : vector<2x8x128xf32> to vector<2x1x128xf32>
    %128 = vector.shape_cast %127 : vector<2x1x128xf32> to vector<2x128xf32>
    %cst_22 = arith.constant dense<0.000000e+00> : vector<2x128xf32>
    %129 = tpu.matmul %126, %1, %cst_22 {dimension_numbers = #tpu.dot_dimension_numbers<[1], [0], [0], [1], [0, 0, 1, 1], [], []>, precision = #tpu.contract_precision<fp32>} : vector<2x32xf32>, vector<32x128xf32>, vector<2x128xf32> -> vector<2x128xf32>
    %130 = arith.addf %128, %129 : vector<2x128xf32>
    %131 = arith.negf %130 : vector<2x128xf32>
    %132 = math.exp %131 : vector<2x128xf32>
    %cst_23 = arith.constant 1.000000e+00 : f32
    %133 = vector.broadcast %cst_23 : f32 to vector<2x128xf32>
    %134 = arith.addf %133, %132 : vector<2x128xf32>
    %135 = arith.divf %133, %134 : vector<2x128xf32>
    %136 = math.tanh %130 : vector<2x128xf32>
    %137 = vector.extract_strided_slice %135 {offsets = [0, 0], sizes = [2, 32], strides = [1, 1]} : vector<2x128xf32> to vector<2x32xf32>
    %138 = vector.extract_strided_slice %135 {offsets = [0, 32], sizes = [2, 32], strides = [1, 1]} : vector<2x128xf32> to vector<2x32xf32>
    %139 = vector.extract_strided_slice %136 {offsets = [0, 64], sizes = [2, 32], strides = [1, 1]} : vector<2x128xf32> to vector<2x32xf32>
    %140 = vector.extract_strided_slice %135 {offsets = [0, 96], sizes = [2, 32], strides = [1, 1]} : vector<2x128xf32> to vector<2x32xf32>
    %141 = arith.mulf %138, %124 : vector<2x32xf32>
    %142 = arith.mulf %137, %139 : vector<2x32xf32>
    %143 = arith.addf %141, %142 : vector<2x32xf32>
    %144 = math.tanh %143 : vector<2x32xf32>
    %145 = arith.mulf %140, %144 : vector<2x32xf32>
    %146 = vector.extract_strided_slice %10 {offsets = [0, 7, 0], sizes = [2, 1, 128], strides = [1, 1, 1]} : vector<2x8x128xf32> to vector<2x1x128xf32>
    %147 = vector.shape_cast %146 : vector<2x1x128xf32> to vector<2x128xf32>
    %cst_24 = arith.constant dense<0.000000e+00> : vector<2x128xf32>
    %148 = tpu.matmul %145, %1, %cst_24 {dimension_numbers = #tpu.dot_dimension_numbers<[1], [0], [0], [1], [0, 0, 1, 1], [], []>, precision = #tpu.contract_precision<fp32>} : vector<2x32xf32>, vector<32x128xf32>, vector<2x128xf32> -> vector<2x128xf32>
    %149 = arith.addf %147, %148 : vector<2x128xf32>
    %150 = arith.negf %149 : vector<2x128xf32>
    %151 = math.exp %150 : vector<2x128xf32>
    %cst_25 = arith.constant 1.000000e+00 : f32
    %152 = vector.broadcast %cst_25 : f32 to vector<2x128xf32>
    %153 = arith.addf %152, %151 : vector<2x128xf32>
    %154 = arith.divf %152, %153 : vector<2x128xf32>
    %155 = math.tanh %149 : vector<2x128xf32>
    %156 = vector.extract_strided_slice %154 {offsets = [0, 0], sizes = [2, 32], strides = [1, 1]} : vector<2x128xf32> to vector<2x32xf32>
    %157 = vector.extract_strided_slice %154 {offsets = [0, 32], sizes = [2, 32], strides = [1, 1]} : vector<2x128xf32> to vector<2x32xf32>
    %158 = vector.extract_strided_slice %155 {offsets = [0, 64], sizes = [2, 32], strides = [1, 1]} : vector<2x128xf32> to vector<2x32xf32>
    %159 = vector.extract_strided_slice %154 {offsets = [0, 96], sizes = [2, 32], strides = [1, 1]} : vector<2x128xf32> to vector<2x32xf32>
    %160 = arith.mulf %157, %143 : vector<2x32xf32>
    %161 = arith.mulf %156, %158 : vector<2x32xf32>
    %162 = arith.addf %160, %161 : vector<2x32xf32>
    %163 = math.tanh %162 : vector<2x32xf32>
    %164 = arith.mulf %159, %163 : vector<2x32xf32>
    %cst_26 = arith.constant dense<0.000000e+00> : vector<2x4xf32>
    %165 = tpu.matmul %164, %3, %cst_26 {dimension_numbers = #tpu.dot_dimension_numbers<[1], [0], [0], [1], [0, 0, 1, 1], [], []>, precision = #tpu.contract_precision<fp32>} : vector<2x32xf32>, vector<32x4xf32>, vector<2x4xf32> -> vector<2x4xf32>
    %166 = vector.broadcast %4 : vector<1x4xf32> to vector<2x4xf32>
    %167 = arith.addf %165, %166 : vector<2x4xf32>
    %cst_27 = arith.constant dense<0xFF800000> : vector<2xf32>
    %168 = vector.multi_reduction <maximumf>, %167, %cst_27 [1] : vector<2x4xf32> to vector<2xf32>
    %169 = vector.shape_cast %168 : vector<2xf32> to vector<2x1xf32>
    %170 = vector.broadcast %169 : vector<2x1xf32> to vector<2x4xf32>
    %171 = arith.subf %167, %170 : vector<2x4xf32>
    %172 = math.exp %171 : vector<2x4xf32>
    %cst_28 = arith.constant dense<0.000000e+00> : vector<2xf32>
    %173 = vector.multi_reduction <add>, %172, %cst_28 [1] : vector<2x4xf32> to vector<2xf32>
    %174 = vector.shape_cast %173 : vector<2xf32> to vector<2x1xf32>
    %175 = vector.broadcast %174 : vector<2x1xf32> to vector<2x4xf32>
    %176 = arith.divf %172, %175 : vector<2x4xf32>
    %c0_29 = arith.constant 0 : index
    %c0_30 = arith.constant 0 : index
    %177 = vector.load %arg2[%c0_29, %c0_30] : memref<2x4xf32, #tpu.memory_space<vmem>>, vector<2x4xf32>
    tpu.vector_store %arg2[%c0_29, %c0_30], %176 {strides = array<i32>} : memref<2x4xf32, #tpu.memory_space<vmem>>, vector<2x4xf32>,
    return
  }
}

</mosaic_0001>

<bundles_post_ra>
// kernel: lstm_forward.1
= control target key start
LH: loop header
LB: loop body
LE: loop exit
PB: predicated region body
PF: predicated region fallthrough
CT: control target
= control target key end

     0   :  { %7 = vsyncpa [#allocation3], 0  ;;  %s7625_s0 = inlined_call_operand.vmem [shape: f32[2,8,4], index: 0, kind: input, shape index: {}]   ;;  %s7626_s1 = inlined_call_operand.hbm [shape: f32[88,128], index: 1, kind: input, shape index: {}]   ;;  %s7627_s2 = inlined_call_operand.hbm [shape: f32[2,4], index: 2, kind: output, shape index: {}]  }
   0x1   :  { %8 = vsyncpa [#allocation4], 0  ;;  %s7040_s9 = smov [#allocation2]   ;;  %s6992_s13 = scalar_lea.hbm %s7626_s1, 1408 }
   0x2   :  { %s16_s10 = sshll.u32 %s7040_s9, 4  ;;  %p6993_p0 = scmp.ne.s32.totalorder %s7626_s1, %s6992_s13  ;;  %s17_s10 = int_to_ptr.vmem [resolvable:$true] %s16_s10 }
   0x3   :  { %p6996_p1 = scmp.lt.u32.totalorder %s6992_s13, %s7626_s1 }
   0x5   :  { %p6998_p2 = pnand %p6996_p1, %p6993_p0 }
   0x7   :  { %7001 = shalt.err (!%p6998_p2)
}
   0x8   :  { %s7002_s18 = scalar_lea.vmem %s17_s10, 1408  ;;  %p7007_p4 = scmp.lt.s32.totalorder %s17_s10, %s17_s10 }
   0x9   :  { %p7003_p3 = scmp.ne.s32.totalorder %s17_s10, %s7002_s18  ;;  %p7008_p5 = scmp.lt.s32.totalorder %s7002_s18, %s7002_s18 }
   0xb   :  { %p7009_p6 = por %p7008_p5, %p7007_p4 }
   0xd   :  { %p7010_p7 = pnand %p7009_p6, %p7003_p3 }
   0xf   :  { %7013 = shalt.err (!%p7010_p7)
}
  0x10   :  { %s7041_s19 = smov 128   ;;  %s7042_s20 = smov 8  }
  0x11   :  { %22 = dma.hbm_to_vmem [thread:$0]  %s7626_s1, 1408, %s17_s10, [#allocation3], %s7041_s19, %s7041_s19, %s7042_s20  }
  0x12   :  { %7036 = dma.done.wait [#allocation3], 1408  }
  0x13   :  { %7037 = vsyncadd [#allocation3], 4294965888  ;;  %vm50_vm0 = vcmask 1043456   ;;  %vm43_vm1 = vcmask 31744   ;;  %v26_v0 = vld [vmem:[#allocation2] sm:$0xf] }
  0x14   :  { %v37_v1 = vld [vmem:[%s7625_s0] sm:$0xff]  ;;  %v38_v2 = vld [vmem:[%s7625_s0 + $0x8] sm:$0xff]  ;;  %v52_v3 = vsel %vm50_vm0, %v26_v0, 0  ;;  %v28_v7 = vld [vmem:[#allocation2 + $0x10] sm:$0xff]  ;;  %v7043_v23 = vmov 0.0|0.0   ;;  %vm7044_vm2 = vmmov 0  }
  0x15   :  { %v45_v4 = vsel %vm43_vm1, %v37_v1, 0  ;;  %v48_v5 = vsel %vm43_vm1, %v38_v2, 0  ;;  %v27_v6 = vld [vmem:[#allocation2 + $0x8] sm:$0xff]  ;;  %v7082_v8 = vand.u32 4294901760, %v52_v3  ;;  %v29_v12 = vld [vmem:[#allocation2 + $0x18] sm:$0xff]  ;;  %v551_v13 = vand.u32 4294901760, %v28_v7 }
  0x16   :  { %v7084_v9 = vand.u32 4294901760, %v45_v4  ;;  %v7086_v10 = vand.u32 4294901760, %v48_v5  ;;  %v548_v11 = vand.u32 4294901760, %v27_v6  ;;  %v30_v14 = vld [vmem:[#allocation2 + $0x20] sm:$0xff]  ;;  %v554_v20 = vand.u32 4294901760, %v29_v12  ;;  %s7046_s0 = smov 64  }
  0x17   :  { %5801 = vmatprep.subr.mxu1 %v7082_v8  ;;  %v142_v16 = vsub.f32 %v52_v3, %v7082_v8  ;;  %v7096_v19 = vsub.f32 %v28_v7, %v551_v13  ;;  %v557_v25 = vand.u32 4294901760, %v30_v14  ;;  %v7045_v36 = vmov 0.0   ;;  %v5495_v57 = vld [vmem:[#allocation2 + $0x28] ss:$0 sm:$0xff]  ;;  %s7047_s1 = smov 32   ;;  %s7048_s27 = smov [#allocation5]  }
  0x18   :  { %v121_v15 = vsub.f32 %v45_v4, %v7084_v9  ;;  %v131_v17 = vsub.f32 %v48_v5, %v7086_v10  ;;  %5808 = vmatprep.mubr.f32.mxu0 %v7084_v9  ;;  %5802 = vmatpush3.msra.mxu1 %v7082_v8  ;;  %v7094_v18 = vsub.f32 %v27_v6, %v548_v11  ;;  %vm1089_vm3 = vcmask 1041409   ;;  %s5486_s28 = sshll.u32 %s7048_s27, 4  ;;  %s5487_s28 = int_to_ptr.vmem [resolvable:$true] %s5486_s28 }
  0x19   :  { %v143_v22 = vand.u32 4294901760, %v142_v16  ;;  %6437 = vmatprep.subr.bf16.mxu1 %v7043_v23  ;;  %v7103_v30 = vsub.f32 %v29_v12, %v554_v20  ;;  %v7105_v34 = vsub.f32 %v30_v14, %v557_v25  ;;  %v7117_v37 = vpack.c.bf16 %v551_v13, %v548_v11  ;;  %s7014_s29 = scalar_lea.vmem %s5487_s28, 32  ;;  %p7019_p9 = scmp.lt.s32.totalorder %s5487_s28, %s5487_s28 }
  0x1a   :  { %v122_v21 = vand.u32 4294901760, %v121_v15  ;;  %v132_v24 = vand.u32 4294901760, %v131_v17  ;;  %v7101_v29 = vpack.c.bf16 %v7096_v19, %v7094_v18  ;;  %v7122_v38 = vpack.c.bf16 %v557_v25, %v554_v20  ;;  %p7015_p8 = scmp.ne.s32.totalorder %s5487_s28, %s7014_s29  ;;  %p7020_p10 = scmp.lt.s32.totalorder %s7014_s29, %s7014_s29 }
  0x1b   :  { %v144_v27 = vsub.f32 %v142_v16, %v143_v22  ;;  %v7111_v35 = vpack.c.bf16 %v7105_v34, %v7103_v30  ;;  %v629_v39 = vand.u32 4294901760, %v7094_v18  ;;  %v636_v40 = vand.u32 4294901760, %v7096_v19 }
  0x1c   :  { %v123_v26 = vsub.f32 %v121_v15, %v122_v21  ;;  %v133_v28 = vsub.f32 %v131_v17, %v132_v24  ;;  %v643_v42 = vand.u32 4294901760, %v7103_v30  ;;  %v650_v43 = vand.u32 4294901760, %v7105_v34  ;;  %p7021_p11 = por %p7020_p10, %p7019_p9 }
  0x1d   :  { %v145_v32 = vand.u32 4294901760, %v144_v27  ;;  %v7132_v41 = vpack.c.bf16 %v636_v40, %v629_v39  ;;  %v630_v45 = vsub.f32 %v7094_v18, %v629_v39  ;;  %v637_v46 = vsub.f32 %v7096_v19, %v636_v40 }
  0x1e   :  { %v124_v31 = vand.u32 4294901760, %v123_v26  ;;  %v134_v33 = vand.u32 4294901760, %v133_v28  ;;  %v7139_v44 = vpack.c.bf16 %v650_v43, %v643_v42  ;;  %v644_v49 = vsub.f32 %v7103_v30, %v643_v42  ;;  %p7022_p12 = pnand %p7021_p11, %p7015_p8 }
  0x1f   :  { %5806 = vmatprep.subr.mxu0 %v145_v32  ;;  %v631_v47 = vand.u32 4294901760, %v630_v45  ;;  %v638_v48 = vand.u32 4294901760, %v637_v46  ;;  %v651_v50 = vsub.f32 %v7105_v34, %v650_v43  ;;  %vm543_vm4 = vcmask 261120  }
  0x20   :  { %5803 = vmatprep.mubr.f32.mxu1 %v124_v31  ;;  %5807 = vmatpush3.msra.mxu0 %v145_v32  ;;  %v645_v52 = vand.u32 4294901760, %v644_v49  ;;  %vm5467_vm5 = vcmask 25600  }
  0x21   :  { %5804 = vmatmul.mubr.f32.vlgmr.msra.gmra.mrb[0].mxu1 %v134_v33  ;;  %5809 = vmatmul.mubr.f32.vlgmr.msra.gmra.mrb[0].mxu0 %v7086_v10  ;;  %v7175_v51 = vpack.c.bf16 %v638_v48, %v631_v47  ;;  %v652_v53 = vand.u32 4294901760, %v651_v50 }
  0x22   :  { %6439 = vmatpush3.bf16.msra.mxu1 %v7101_v29  ;;  %5811 = vmatprep.subr.mxu0 %v142_v16 }
  0x23   :  { %6440 = vmatprep.subr.bf16.mxu1 %v7043_v23  ;;  %5812 = vmatpush3.msra.mxu0 %v142_v16  ;;  %v7181_v54 = vpack.c.bf16 %v652_v53, %v645_v52 }
  0x24   :  { %5861 = vmatprep.mubr.msk.f32.mxu1 %vm7044_vm2, %v7045_v36  ;;  %5813 = vmatprep.mubr.f32.mxu0 %v121_v15 }
  0x25   :  { %5816 = vmatprep.subr.mxu0 %v7082_v8 }
  0x26   :  { %6442 = vmatpush3.bf16.msra.mxu1 %v7111_v35 }
  0x27   :  { %6443 = vmatprep.subr.bf16.mxu1 %v7043_v23 }
  0x29   :  { %5862 = vmatmul.mubr.f32.vlgmr.msra.gmra.mrb[2].mxu1 %v7045_v36  ;;  %5814 = vmatmul.mubr.f32.vlgmr.msra.gmra.mrb[0].mxu0 %v131_v17 }
  0x2a   :  { %6445 = vmatpush3.bf16.msra.mxu1 %v7117_v37  ;;  %5817 = vmatpush3.msra.mxu0 %v7082_v8 }
  0x2b   :  { %6446 = vmatprep.subr.bf16.mxu1 %v7043_v23  ;;  %5872 = vmatprep.mubr.msk.f32.mxu1 %vm7044_vm2, %v7045_v36 }
  0x2c   :  { %5818 = vmatprep.mubr.f32.mxu0 %v122_v21  ;;  %5821 = vmatprep.subr.mxu0 %v143_v22 }
  0x2e   :  { %6448 = vmatpush3.bf16.msra.mxu1 %v7122_v38 }
  0x2f   :  { %6449 = vmatprep.subr.bf16.mxu1 %v7043_v23 }
  0x31   :  { %5873 = vmatmul.mubr.f32.vlgmr.msra.gmra.mrb[2].mxu1 %v7045_v36  ;;  %5819 = vmatmul.mubr.f32.vlgmr.msra.gmra.mrb[0].mxu0 %v132_v24 }
  0x32   :  { %6451 = vmatpush3.bf16.msra.mxu1 %v7132_v41  ;;  %5822 = vmatpush3.msra.mxu0 %v143_v22 }
  0x33   :  { %6452 = vmatprep.subr.bf16.mxu1 %v7043_v23  ;;  %5883 = vmatprep.mubr.msk.f32.mxu1 %vm7044_vm2, %v7045_v36 }
  0x34   :  { %5823 = vmatprep.mubr.f32.mxu0 %v7084_v9  ;;  %5826 = vmatprep.subr.mxu0 %v7082_v8 }
  0x36   :  { %6454 = vmatpush3.bf16.msra.mxu1 %v7139_v44 }
  0x37   :  { %6455 = vmatprep.subr.bf16.mxu1 %v7043_v23 }
  0x39   :  { %5884 = vmatmul.mubr.f32.vlgmr.msra.gmra.mrb[2].mxu1 %v7045_v36  ;;  %5824 = vmatmul.mubr.f32.vlgmr.msra.gmra.mrb[0].mxu0 %v7086_v10 }
  0x3a   :  { %6457 = vmatpush3.bf16.msra.mxu1 %v7117_v37  ;;  %5827 = vmatpush3.msra.mxu0 %v7082_v8 }
  0x3b   :  { %6458 = vmatprep.subr.bf16.mxu1 %v7043_v23  ;;  %5894 = vmatprep.mubr.msk.f32.mxu1 %vm7044_vm2, %v7045_v36 }
  0x3c   :  { %5828 = vmatprep.mubr.f32.mxu0 %v7084_v9  ;;  %6425 = vmatprep.subr.bf16.mxu0 %v7043_v23 }
  0x3e   :  { %6460 = vmatpush3.bf16.msra.mxu1 %v7122_v38 }
  0x3f   :  { %6497 = vmatprep.subr.bf16.mxu1 %v7043_v23 }
  0x41   :  { %5895 = vmatmul.mubr.f32.vlgmr.msra.gmra.mrb[2].mxu1 %v7045_v36  ;;  %5829 = vmatmul.mubr.f32.vlgmr.msra.gmra.mrb[0].mxu0 %v7086_v10 }
  0x42   :  { %6499 = vmatpush3.bf16.msra.mxu1 %v7117_v37  ;;  %6427 = vmatpush3.bf16.msra.mxu0 %v7117_v37 }
  0x43   :  { %5839 = vmatprep.mubr.msk.f32.mxu0 %vm7044_vm2, %v7045_v36  ;;  %6428 = vmatprep.subr.bf16.mxu0 %v7043_v23 }
  0x44   :  { %6500 = vmatprep.subr.bf16.mxu1 %v7043_v23  ;;  %5971 = vmatprep.mubr.msk.f32.mxu1 %vm7044_vm2, %v7045_v36 }
  0x46   :  { %6502 = vmatpush3.bf16.msra.mxu1 %v7122_v38  ;;  %6430 = vmatpush3.bf16.msra.mxu0 %v7122_v38 }
  0x47   :  { %6503 = vmatprep.subr.bf16.mxu1 %v7043_v23  ;;  %6431 = vmatprep.subr.bf16.mxu0 %v7043_v23 }
  0x49   :  { %5840 = vmatmul.mubr.f32.vlgmr.msra.gmra.mrb[2].mxu0 %v7045_v36 }
  0x4a   :  { %6433 = vmatpush3.bf16.msra.mxu0 %v7175_v51  ;;  %5850 = vmatprep.mubr.msk.f32.mxu0 %vm7044_vm2, %v7045_v36 }
  0x4b   :  { %6434 = vmatprep.subr.bf16.mxu0 %v7043_v23 }
  0x4e   :  { %6436 = vmatpush3.bf16.msra.mxu0 %v7181_v54 }
  0x4f   :  { %6461 = vmatprep.subr.bf16.mxu0 %v7043_v23 }
  0x51   :  { %5851 = vmatmul.mubr.f32.vlgmr.msra.gmra.mrb[2].mxu0 %v7045_v36 }
  0x52   :  { %6463 = vmatpush3.bf16.msra.mxu0 %v7117_v37  ;;  %5905 = vmatprep.mubr.msk.f32.mxu0 %vm7044_vm2, %v7045_v36 }
  0x53   :  { %6464 = vmatprep.subr.bf16.mxu0 %v7043_v23 }
  0x56   :  { %6466 = vmatpush3.bf16.msra.mxu0 %v7122_v38 }
  0x57   :  { %6467 = vmatprep.subr.bf16.mxu0 %v7043_v23 }
  0xf4   :  { %v5805_v55 = vpop.f32.mrb[0].mxu1 }
  0xf5   :  { %v126_v56 = vpop.f32.mrb[1].mxu1  ;;  %v137_v58 = vadd.f32 %v5805_v55, %v5495_v57 }
  0xf6   :  { %v127_v60 = vadd.f32 %v5495_v57, %v126_v56 }
 0x114   :  { %v1028_v59 = vpop.f32.mrb[2].mxu1  ;;  %v5830_v62 = vpop.f32.mrb[0].mxu0 }
 0x115   :  { %v5896_v61 = vpop.f32.mrb[3].mxu1  ;;  %v7195_v63 = vadd.f32 %v5830_v62, %v137_v58  ;;  %v533_v0 = vpop.f32.mrb[1].mxu0 }
 0x116   :  { %v7197_v1 = vadd.f32 %v533_v0, %v127_v60 }
 0x124   :  { %v713_v2 = vpop.f32.mrb[2].mxu0 }
 0x125   :  { %v6753_v3 = vadd.f32 %v1028_v59, %v713_v2  ;;  %v5852_v4 = vpop.f32.mrb[3].mxu0 }
 0x127   :  { %v1033_v5 = vrot.slane %v6753_v3, 1  ;;  %v1036_v7 = vadd.f32 %v6753_v3, %v7197_v1 }
 0x129   :  { %v1037_v6 = vadd.f32 %v7195_v63, %v1033_v5  ;;  %v5496_v11 = vmul.f32 -1.442695, %v1036_v7 }
 0x12b   :  { %6860 = vtanh.f32 %v1037_v6  ;;  %v5497_v10 = vmul.f32 -1.442695, %v1037_v6 }
 0x12c   :  { %6862 = vtanh.f32 %v1036_v7 }
 0x12d   :  { %6864 = vpow2.f32 %v5497_v10 }
 0x12e   :  { %6866 = vpow2.f32 %v5496_v11 }
 0x135   :  { %v6861_v8 = vpop.eup %6860 }
 0x136   :  { %1058 = vrot.lane.b32.xlu0 %v6861_v8, %s7046_s0  ;;  %v6863_v9 = vpop.eup %6862 }
 0x137   :  { %v6865_v12 = vpop.eup %6864 }
 0x138   :  { %v1045_v13 = vadd.f32 1.0, %v6865_v12  ;;  %v6867_v14 = vpop.eup %6866 }
 0x139   :  { %v1044_v15 = vadd.f32 1.0, %v6867_v14 }
 0x13a   :  { %1056 = vrot.lane.b32.xlu0 %v6863_v9, %s7046_s0  ;;  %6868 = vrcp.f32 %v1045_v13 }
 0x13b   :  { %6870 = vrcp.f32 %v1044_v15 }
 0x144   :  { %v6869_v16 = vpop.eup %6868 }
 0x145   :  { %v6871_v19 = vpop.eup %6870  ;;  %v1053_v22 = vmul.f32 0.0, %v6869_v16 }
 0x146   :  { %v1052_v26 = vmul.f32 0.0, %v6871_v19 }
 0x1a8   :  { %v1059_v17 = vpop.permute.xlu0 %1058 }
 0x1a9   :  { %v1063_v18 = vmul.f32 %v6869_v16, %v1059_v17 }
 0x1ab   :  { %1068 = vrot.lane.b32.xlu1 %v1063_v18, %s7047_s1 }
 0x1ac   :  { %v1057_v20 = vpop.permute.xlu0 %1056 }
 0x1ad   :  { %v1062_v21 = vmul.f32 %v6871_v19, %v1057_v20 }
 0x1af   :  { %1066 = vrot.lane.b32.xlu1 %v1062_v21, %s7047_s1 }
 0x21d   :  { %v1069_v24 = vpop.permute.xlu1 %1068 }
 0x21e   :  { %v7205_v25 = vadd.f32 %v1069_v24, %v1053_v22 }
 0x220   :  { %6872 = vtanh.f32 %v7205_v25  ;;  %v1603_v10 = vrot.slane %v7205_v25, 7 }
 0x221   :  { %v1067_v27 = vpop.permute.xlu1 %1066 }
 0x222   :  { %v7208_v28 = vadd.f32 %v1067_v27, %v1052_v26 }
 0x224   :  { %6874 = vtanh.f32 %v7208_v28  ;;  %v1602_v12 = vrot.slane %v7208_v28, 7 }
 0x22a   :  { %v6873_v30 = vpop.eup %6872 }
 0x22b   :  { %1080 = vrot.lane.b32.xlu0 %v6873_v30, %s7046_s0 }
 0x22e   :  { %v6875_v31 = vpop.eup %6874 }
 0x22f   :  { %1078 = vrot.lane.b32.xlu1 %v6875_v31, %s7046_s0 }
 0x29d   :  { %v1081_v32 = vpop.permute.xlu0 %1080 }
 0x29e   :  { %v1085_v33 = vmul.f32 %v6869_v16, %v1081_v32 }
 0x2a0   :  { %v1088_v39 = vrot.slane %v1085_v33, 7 }
 0x2a1   :  { %v1079_v34 = vpop.permute.xlu1 %1078 }
 0x2a2   :  { %v1084_v40 = vmul.f32 %v6871_v19, %v1079_v34 }
 0x2a4   :  { %v1090_v42 = vsel %vm1089_vm3, %v1088_v39, %v1084_v40 }
 0x2a5   :  { %1091 = vrot.lane.b32.xlu0 %v1090_v42, %s7047_s1 }
 0x317   :  { %v1092_v43 = vpop.permute.xlu0 %1091 }
 0x318   :  { %v1093_v45 = vsel %vm543_vm4, %v1092_v43, 0 }
 0x319   :  { %v1164_v46 = vand.u32 4294901760, %v1093_v45 }
 0x31b   :  { %v1165_v47 = vsub.f32 %v1093_v45, %v1164_v46 }
 0x31d   :  { %v1166_v48 = vand.u32 4294901760, %v1165_v47 }
 0x31f   :  { %v1167_v49 = vsub.f32 %v1165_v47, %v1166_v48 }
 0x321   :  { %v1168_v50 = vand.u32 4294901760, %v1167_v49 }
 0x323   :  { %5906 = vmatmul.mubr.f32.vlgmr.msra.gmra.mrb[4].mxu0 %v1168_v50 }
 0x324   :  { %6469 = vmatpush3.bf16.msra.mxu0 %v7175_v51  ;;  %5916 = vmatprep.mubr.msk.f32.mxu0 %vm7044_vm2, %v7045_v36 }
 0x325   :  { %6470 = vmatprep.subr.bf16.mxu0 %v7043_v23 }
 0x328   :  { %6472 = vmatpush3.bf16.msra.mxu0 %v7181_v54 }
 0x329   :  { %6473 = vmatprep.subr.bf16.mxu0 %v7043_v23 }
 0x32b   :  { %5917 = vmatmul.mubr.f32.vlgmr.msra.gmra.mrb[4].mxu0 %v1164_v46 }
 0x32c   :  { %6475 = vmatpush3.bf16.msra.mxu0 %v7101_v29  ;;  %5927 = vmatprep.mubr.msk.f32.mxu0 %vm7044_vm2, %v7045_v36 }
 0x32d   :  { %6476 = vmatprep.subr.bf16.mxu0 %v7043_v23 }
 0x330   :  { %6478 = vmatpush3.bf16.msra.mxu0 %v7111_v35 }
 0x331   :  { %6479 = vmatprep.subr.bf16.mxu0 %v7043_v23 }
 0x333   :  { %5928 = vmatmul.mubr.f32.vlgmr.msra.gmra.mrb[4].mxu0 %v1165_v47 }
 0x334   :  { %6481 = vmatpush3.bf16.msra.mxu0 %v7117_v37  ;;  %5938 = vmatprep.mubr.msk.f32.mxu0 %vm7044_vm2, %v7045_v36 }
 0x335   :  { %6482 = vmatprep.subr.bf16.mxu0 %v7043_v23 }
 0x338   :  { %6484 = vmatpush3.bf16.msra.mxu0 %v7122_v38 }
 0x339   :  { %6485 = vmatprep.subr.bf16.mxu0 %v7043_v23 }
 0x33b   :  { %5939 = vmatmul.mubr.f32.vlgmr.msra.gmra.mrb[4].mxu0 %v1166_v48 }
 0x33c   :  { %6487 = vmatpush3.bf16.msra.mxu0 %v7132_v41  ;;  %5949 = vmatprep.mubr.msk.f32.mxu0 %vm7044_vm2, %v7045_v36 }
 0x33d   :  { %6488 = vmatprep.subr.bf16.mxu0 %v7043_v23 }
 0x340   :  { %6490 = vmatpush3.bf16.msra.mxu0 %v7139_v44 }
 0x341   :  { %6491 = vmatprep.subr.bf16.mxu0 %v7043_v23 }
 0x343   :  { %5950 = vmatmul.mubr.f32.vlgmr.msra.gmra.mrb[4].mxu0 %v1164_v46 }
 0x344   :  { %6493 = vmatpush3.bf16.msra.mxu0 %v7117_v37  ;;  %5960 = vmatprep.mubr.msk.f32.mxu0 %vm7044_vm2, %v7045_v36 }
 0x345   :  { %6494 = vmatprep.subr.bf16.mxu0 %v7043_v23 }
 0x348   :  { %6496 = vmatpush3.bf16.msra.mxu0 %v7122_v38 }
 0x349   :  { %6533 = vmatprep.subr.bf16.mxu0 %v7043_v23 }
 0x34b   :  { %5961 = vmatmul.mubr.f32.vlgmr.msra.gmra.mrb[4].mxu0 %v1164_v46 }
 0x34c   :  { %6535 = vmatpush3.bf16.msra.mxu0 %v7117_v37  ;;  %6037 = vmatprep.mubr.msk.f32.mxu0 %vm7044_vm2, %v7045_v36 }
 0x34d   :  { %6536 = vmatprep.subr.bf16.mxu0 %v7043_v23 }
 0x350   :  { %6538 = vmatpush3.bf16.msra.mxu0 %v7122_v38 }
 0x351   :  { %6539 = vmatprep.subr.bf16.mxu0 %v7043_v23 }
 0x41e   :  { %v1576_v52 = vpop.f32.mrb[4].mxu0 }
 0x41f   :  { %v1581_v53 = vrot.slane %v1576_v52, 7  ;;  %v1585_v55 = vadd.f32 %v7195_v63, %v1576_v52  ;;  %v5962_v56 = vpop.f32.mrb[5].mxu0 }
 0x421   :  { %v1584_v57 = vadd.f32 %v7197_v1, %v1581_v53  ;;  %6876 = vtanh.f32 %v1585_v55  ;;  %v5499_v60 = vmul.f32 -1.442695, %v1585_v55 }
 0x423   :  { %6878 = vtanh.f32 %v1584_v57  ;;  %v5498_v61 = vmul.f32 -1.442695, %v1584_v57 }
 0x424   :  { %6880 = vpow2.f32 %v5499_v60 }
 0x425   :  { %6882 = vpow2.f32 %v5498_v61 }
 0x42b   :  { %v6877_v58 = vpop.eup %6876 }
 0x42c   :  { %1612 = vrot.lane.b32.xlu0 %v6877_v58, %s7046_s0 }
 0x42d   :  { %v6879_v59 = vpop.eup %6878 }
 0x42e   :  { %1610 = vrot.lane.b32.xlu1 %v6879_v59, %s7046_s0  ;;  %v6881_v62 = vpop.eup %6880 }
 0x42f   :  { %v6883_v0 = vpop.eup %6882  ;;  %v1593_v2 = vadd.f32 1.0, %v6881_v62 }
 0x430   :  { %v1592_v3 = vadd.f32 1.0, %v6883_v0 }
 0x431   :  { %6884 = vrcp.f32 %v1593_v2 }
 0x432   :  { %6886 = vrcp.f32 %v1592_v3 }
 0x43b   :  { %v6885_v4 = vpop.eup %6884 }
 0x43c   :  { %v6887_v7 = vpop.eup %6886  ;;  %v1607_v11 = vmul.f32 %v6885_v4, %v1603_v10 }
 0x43d   :  { %v1606_v15 = vmul.f32 %v6887_v7, %v1602_v12 }
 0x49e   :  { %v1613_v5 = vpop.permute.xlu0 %1612 }
 0x49f   :  { %v1617_v6 = vmul.f32 %v6885_v4, %v1613_v5 }
 0x4a0   :  { %v1611_v8 = vpop.permute.xlu1 %1610 }
 0x4a1   :  { %1622 = vrot.lane.b32.xlu0 %v1617_v6, %s7047_s1  ;;  %v1616_v9 = vmul.f32 %v6887_v7, %v1611_v8 }
 0x4a3   :  { %1620 = vrot.lane.b32.xlu1 %v1616_v9, %s7047_s1 }
 0x513   :  { %v1623_v13 = vpop.permute.xlu0 %1622 }
 0x514   :  { %v7260_v14 = vadd.f32 %v1623_v13, %v1607_v11 }
 0x515   :  { %v1621_v16 = vpop.permute.xlu1 %1620 }
 0x516   :  { %6888 = vtanh.f32 %v7260_v14  ;;  %v7263_v17 = vadd.f32 %v1621_v16, %v1606_v15  ;;  %v2157_v2 = vrot.slane %v7260_v14, 7 }
 0x518   :  { %6890 = vtanh.f32 %v7263_v17  ;;  %v2156_v0 = vrot.slane %v7263_v17, 7 }
 0x520   :  { %v6889_v18 = vpop.eup %6888 }
 0x521   :  { %1634 = vrot.lane.b32.xlu0 %v6889_v18, %s7046_s0 }
 0x522   :  { %v6891_v19 = vpop.eup %6890 }
 0x523   :  { %1632 = vrot.lane.b32.xlu1 %v6891_v19, %s7046_s0 }
 0x593   :  { %v1635_v20 = vpop.permute.xlu0 %1634 }
 0x594   :  { %v1639_v24 = vmul.f32 %v6885_v4, %v1635_v20 }
 0x595   :  { %v1633_v21 = vpop.permute.xlu1 %1632 }
 0x596   :  { %v1638_v22 = vmul.f32 %v6887_v7, %v1633_v21 }
 0x598   :  { %v1642_v25 = vrot.slane %v1638_v22, 1 }
 0x59a   :  { %v1643_v26 = vsel %vm1089_vm3, %v1639_v24, %v1642_v25 }
 0x59b   :  { %1644 = vrot.lane.b32.xlu1 %v1643_v26, %s7047_s1 }
 0x60d   :  { %v1645_v27 = vpop.permute.xlu1 %1644 }
 0x60e   :  { %v1646_v28 = vsel %vm543_vm4, %v1645_v27, 0 }
 0x60f   :  { %v1717_v30 = vand.u32 4294901760, %v1646_v28 }
 0x611   :  { %v1718_v31 = vsub.f32 %v1646_v28, %v1717_v30 }
 0x613   :  { %v1719_v32 = vand.u32 4294901760, %v1718_v31 }
 0x615   :  { %v1720_v33 = vsub.f32 %v1718_v31, %v1719_v32 }
 0x617   :  { %v1721_v34 = vand.u32 4294901760, %v1720_v33 }
 0x619   :  { %5972 = vmatmul.mubr.f32.vlgmr.msra.gmra.mrb[4].mxu1 %v1721_v34 }
 0x61a   :  { %6505 = vmatpush3.bf16.msra.mxu1 %v7175_v51  ;;  %5982 = vmatprep.mubr.msk.f32.mxu1 %vm7044_vm2, %v7045_v36 }
 0x61b   :  { %6506 = vmatprep.subr.bf16.mxu1 %v7043_v23 }
 0x61e   :  { %6508 = vmatpush3.bf16.msra.mxu1 %v7181_v54 }
 0x61f   :  { %6509 = vmatprep.subr.bf16.mxu1 %v7043_v23 }
 0x621   :  { %5983 = vmatmul.mubr.f32.vlgmr.msra.gmra.mrb[4].mxu1 %v1717_v30 }
 0x622   :  { %6511 = vmatpush3.bf16.msra.mxu1 %v7101_v29  ;;  %5993 = vmatprep.mubr.msk.f32.mxu1 %vm7044_vm2, %v7045_v36 }
 0x623   :  { %6512 = vmatprep.subr.bf16.mxu1 %v7043_v23 }
 0x626   :  { %6514 = vmatpush3.bf16.msra.mxu1 %v7111_v35 }
 0x627   :  { %6515 = vmatprep.subr.bf16.mxu1 %v7043_v23 }
 0x629   :  { %5994 = vmatmul.mubr.f32.vlgmr.msra.gmra.mrb[4].mxu1 %v1718_v31 }
 0x62a   :  { %6517 = vmatpush3.bf16.msra.mxu1 %v7117_v37  ;;  %6004 = vmatprep.mubr.msk.f32.mxu1 %vm7044_vm2, %v7045_v36 }
 0x62b   :  { %6518 = vmatprep.subr.bf16.mxu1 %v7043_v23 }
 0x62e   :  { %6520 = vmatpush3.bf16.msra.mxu1 %v7122_v38 }
 0x62f   :  { %6521 = vmatprep.subr.bf16.mxu1 %v7043_v23 }
 0x631   :  { %6005 = vmatmul.mubr.f32.vlgmr.msra.gmra.mrb[4].mxu1 %v1719_v32 }
 0x632   :  { %6523 = vmatpush3.bf16.msra.mxu1 %v7132_v41  ;;  %6015 = vmatprep.mubr.msk.f32.mxu1 %vm7044_vm2, %v7045_v36 }
 0x633   :  { %6524 = vmatprep.subr.bf16.mxu1 %v7043_v23 }
 0x636   :  { %6526 = vmatpush3.bf16.msra.mxu1 %v7139_v44 }
 0x637   :  { %6527 = vmatprep.subr.bf16.mxu1 %v7043_v23 }
 0x639   :  { %6016 = vmatmul.mubr.f32.vlgmr.msra.gmra.mrb[4].mxu1 %v1717_v30 }
 0x63a   :  { %6529 = vmatpush3.bf16.msra.mxu1 %v7117_v37  ;;  %6026 = vmatprep.mubr.msk.f32.mxu1 %vm7044_vm2, %v7045_v36 }
 0x63b   :  { %6530 = vmatprep.subr.bf16.mxu1 %v7043_v23 }
 0x63e   :  { %6532 = vmatpush3.bf16.msra.mxu1 %v7122_v38 }
 0x63f   :  { %6569 = vmatprep.subr.bf16.mxu1 %v7043_v23 }
 0x641   :  { %6027 = vmatmul.mubr.f32.vlgmr.msra.gmra.mrb[4].mxu1 %v1717_v30 }
 0x642   :  { %6571 = vmatpush3.bf16.msra.mxu1 %v7117_v37  ;;  %6103 = vmatprep.mubr.msk.f32.mxu1 %vm7044_vm2, %v7045_v36 }
 0x643   :  { %6572 = vmatprep.subr.bf16.mxu1 %v7043_v23 }
 0x646   :  { %6574 = vmatpush3.bf16.msra.mxu1 %v7122_v38 }
 0x647   :  { %6575 = vmatprep.subr.bf16.mxu1 %v7043_v23 }
 0x714   :  { %v2129_v39 = vpop.f32.mrb[4].mxu1 }
 0x715   :  { %v2134_v40 = vrot.slane %v2129_v39, 6  ;;  %v2135_v42 = vrot.slane %v2129_v39, 7  ;;  %v6028_v43 = vpop.f32.mrb[5].mxu1 }
 0x717   :  { %v2138_v45 = vadd.f32 %v7197_v1, %v2134_v40  ;;  %v2139_v46 = vadd.f32 %v7195_v63, %v2135_v42 }
 0x719   :  { %6892 = vtanh.f32 %v2138_v45  ;;  %v5500_v49 = vmul.f32 -1.442695, %v2138_v45  ;;  %v5501_v50 = vmul.f32 -1.442695, %v2139_v46 }
 0x71a   :  { %6894 = vtanh.f32 %v2139_v46 }
 0x71b   :  { %6896 = vpow2.f32 %v5500_v49 }
 0x71c   :  { %6898 = vpow2.f32 %v5501_v50 }
 0x723   :  { %v6893_v47 = vpop.eup %6892 }
 0x724   :  { %v6895_v48 = vpop.eup %6894  ;;  %2164 = vrot.lane.b32.xlu0 %v6893_v47, %s7046_s0 }
 0x725   :  { %2166 = vrot.lane.b32.xlu1 %v6895_v48, %s7046_s0  ;;  %v6897_v52 = vpop.eup %6896 }
 0x726   :  { %v6899_v53 = vpop.eup %6898  ;;  %v2146_v55 = vadd.f32 1.0, %v6897_v52 }
 0x727   :  { %v2147_v56 = vadd.f32 1.0, %v6899_v53 }
 0x728   :  { %6900 = vrcp.f32 %v2146_v55 }
 0x729   :  { %6902 = vrcp.f32 %v2147_v56 }
 0x732   :  { %v6901_v57 = vpop.eup %6900 }
 0x733   :  { %v6903_v59 = vpop.eup %6902  ;;  %v2160_v3 = vmul.f32 %v6901_v57, %v2156_v0 }
 0x734   :  { %v2161_v4 = vmul.f32 %v6903_v59, %v2157_v2 }
 0x796   :  { %v2165_v58 = vpop.permute.xlu0 %2164 }
 0x797   :  { %v2167_v60 = vpop.permute.xlu1 %2166  ;;  %v2170_v61 = vmul.f32 %v6901_v57, %v2165_v58 }
 0x798   :  { %v2171_v62 = vmul.f32 %v6903_v59, %v2167_v60 }
 0x799   :  { %2174 = vrot.lane.b32.xlu0 %v2170_v61, %s7047_s1 }
 0x79a   :  { %2176 = vrot.lane.b32.xlu1 %v2171_v62, %s7047_s1 }
 0x80b   :  { %v2175_v5 = vpop.permute.xlu0 %2174 }
 0x80c   :  { %v2177_v6 = vpop.permute.xlu1 %2176  ;;  %v7315_v7 = vadd.f32 %v2175_v5, %v2160_v3 }
 0x80d   :  { %v7317_v8 = vadd.f32 %v2177_v6, %v2161_v4 }
 0x80e   :  { %6904 = vtanh.f32 %v7315_v7  ;;  %v2711_v55 = vrot.slane %v7315_v7, 7 }
 0x80f   :  { %6906 = vtanh.f32 %v7317_v8  ;;  %v2712_v56 = vrot.slane %v7317_v8, 7 }
 0x818   :  { %v6905_v9 = vpop.eup %6904 }
 0x819   :  { %v6907_v10 = vpop.eup %6906  ;;  %2186 = vrot.lane.b32.xlu0 %v6905_v9, %s7046_s0 }
 0x81a   :  { %2188 = vrot.lane.b32.xlu1 %v6907_v10, %s7046_s0 }
 0x88b   :  { %v2187_v11 = vpop.permute.xlu0 %2186 }
 0x88c   :  { %v2189_v12 = vpop.permute.xlu1 %2188  ;;  %v2192_v13 = vmul.f32 %v6901_v57, %v2187_v11 }
 0x88d   :  { %v2193_v14 = vmul.f32 %v6903_v59, %v2189_v12 }
 0x88e   :  { %v2196_v15 = vrot.slane %v2192_v13, 2 }
 0x88f   :  { %v2197_v16 = vrot.slane %v2193_v14, 1 }
 0x891   :  { %v2198_v17 = vsel %vm1089_vm3, %v2197_v16, %v2196_v15 }
 0x892   :  { %2199 = vrot.lane.b32.xlu0 %v2198_v17, %s7047_s1 }
 0x904   :  { %v2200_v18 = vpop.permute.xlu0 %2199 }
 0x905   :  { %v2201_v19 = vsel %vm543_vm4, %v2200_v18, 0 }
 0x906   :  { %v2272_v20 = vand.u32 4294901760, %v2201_v19 }
 0x908   :  { %v2273_v21 = vsub.f32 %v2201_v19, %v2272_v20 }
 0x90a   :  { %v2274_v22 = vand.u32 4294901760, %v2273_v21 }
 0x90c   :  { %v2275_v24 = vsub.f32 %v2273_v21, %v2274_v22 }
 0x90e   :  { %v2276_v25 = vand.u32 4294901760, %v2275_v24 }
 0x910   :  { %6038 = vmatmul.mubr.f32.vlgmr.msra.gmra.mrb[6].mxu0 %v2276_v25 }
 0x911   :  { %6541 = vmatpush3.bf16.msra.mxu0 %v7175_v51  ;;  %6048 = vmatprep.mubr.msk.f32.mxu0 %vm7044_vm2, %v7045_v36 }
 0x912   :  { %6542 = vmatprep.subr.bf16.mxu0 %v7043_v23 }
 0x915   :  { %6544 = vmatpush3.bf16.msra.mxu0 %v7181_v54 }
 0x916   :  { %6545 = vmatprep.subr.bf16.mxu0 %v7043_v23 }
 0x918   :  { %6049 = vmatmul.mubr.f32.vlgmr.msra.gmra.mrb[6].mxu0 %v2272_v20 }
 0x919   :  { %6547 = vmatpush3.bf16.msra.mxu0 %v7101_v29  ;;  %6059 = vmatprep.mubr.msk.f32.mxu0 %vm7044_vm2, %v7045_v36 }
 0x91a   :  { %6548 = vmatprep.subr.bf16.mxu0 %v7043_v23 }
 0x91d   :  { %6550 = vmatpush3.bf16.msra.mxu0 %v7111_v35 }
 0x91e   :  { %6551 = vmatprep.subr.bf16.mxu0 %v7043_v23 }
 0x920   :  { %6060 = vmatmul.mubr.f32.vlgmr.msra.gmra.mrb[6].mxu0 %v2273_v21 }
 0x921   :  { %6553 = vmatpush3.bf16.msra.mxu0 %v7117_v37  ;;  %6070 = vmatprep.mubr.msk.f32.mxu0 %vm7044_vm2, %v7045_v36 }
 0x922   :  { %6554 = vmatprep.subr.bf16.mxu0 %v7043_v23 }
 0x925   :  { %6556 = vmatpush3.bf16.msra.mxu0 %v7122_v38 }
 0x926   :  { %6557 = vmatprep.subr.bf16.mxu0 %v7043_v23 }
 0x928   :  { %6071 = vmatmul.mubr.f32.vlgmr.msra.gmra.mrb[6].mxu0 %v2274_v22 }
 0x929   :  { %6559 = vmatpush3.bf16.msra.mxu0 %v7132_v41  ;;  %6081 = vmatprep.mubr.msk.f32.mxu0 %vm7044_vm2, %v7045_v36 }
 0x92a   :  { %6560 = vmatprep.subr.bf16.mxu0 %v7043_v23 }
 0x92d   :  { %6562 = vmatpush3.bf16.msra.mxu0 %v7139_v44 }
 0x92e   :  { %6563 = vmatprep.subr.bf16.mxu0 %v7043_v23 }
 0x930   :  { %6082 = vmatmul.mubr.f32.vlgmr.msra.gmra.mrb[6].mxu0 %v2272_v20 }
 0x931   :  { %6565 = vmatpush3.bf16.msra.mxu0 %v7117_v37  ;;  %6092 = vmatprep.mubr.msk.f32.mxu0 %vm7044_vm2, %v7045_v36 }
 0x932   :  { %6566 = vmatprep.subr.bf16.mxu0 %v7043_v23 }
 0x935   :  { %6568 = vmatpush3.bf16.msra.mxu0 %v7122_v38 }
 0x936   :  { %6605 = vmatprep.subr.bf16.mxu0 %v7043_v23 }
 0x938   :  { %6093 = vmatmul.mubr.f32.vlgmr.msra.gmra.mrb[6].mxu0 %v2272_v20 }
 0x939   :  { %6607 = vmatpush3.bf16.msra.mxu0 %v7117_v37  ;;  %6169 = vmatprep.mubr.msk.f32.mxu0 %vm7044_vm2, %v7045_v36 }
 0x93a   :  { %6608 = vmatprep.subr.bf16.mxu0 %v7043_v23 }
 0x93d   :  { %6610 = vmatpush3.bf16.msra.mxu0 %v7122_v38 }
 0x93e   :  { %6611 = vmatprep.subr.bf16.mxu0 %v7043_v23 }
 0xa0b   :  { %v2684_v26 = vpop.f32.mrb[6].mxu0 }
 0xa0c   :  { %v2689_v27 = vrot.slane %v2684_v26, 5  ;;  %v2690_v28 = vrot.slane %v2684_v26, 6  ;;  %v6094_v30 = vpop.f32.mrb[7].mxu0 }
 0xa0e   :  { %v2693_v31 = vadd.f32 %v7197_v1, %v2689_v27  ;;  %v2694_v32 = vadd.f32 %v7195_v63, %v2690_v28 }
 0xa10   :  { %6908 = vtanh.f32 %v2693_v31  ;;  %v5502_v39 = vmul.f32 -1.442695, %v2693_v31  ;;  %v5503_v40 = vmul.f32 -1.442695, %v2694_v32 }
 0xa11   :  { %6910 = vtanh.f32 %v2694_v32 }
 0xa12   :  { %6912 = vpow2.f32 %v5502_v39 }
 0xa13   :  { %6914 = vpow2.f32 %v5503_v40 }
 0xa1a   :  { %v6909_v33 = vpop.eup %6908 }
 0xa1b   :  { %v6911_v34 = vpop.eup %6910  ;;  %2719 = vrot.lane.b32.xlu1 %v6909_v33, %s7046_s0 }
 0xa1c   :  { %2721 = vrot.lane.b32.xlu0 %v6911_v34, %s7046_s0  ;;  %v6913_v42 = vpop.eup %6912 }
 0xa1d   :  { %v6915_v43 = vpop.eup %6914  ;;  %v2701_v45 = vadd.f32 1.0, %v6913_v42 }
 0xa1e   :  { %v2702_v46 = vadd.f32 1.0, %v6915_v43 }
 0xa1f   :  { %6916 = vrcp.f32 %v2701_v45 }
 0xa20   :  { %6918 = vrcp.f32 %v2702_v46 }
 0xa29   :  { %v6917_v47 = vpop.eup %6916 }
 0xa2a   :  { %v6919_v49 = vpop.eup %6918  ;;  %v2715_v57 = vmul.f32 %v6917_v47, %v2711_v55 }
 0xa2b   :  { %v2716_v58 = vmul.f32 %v6919_v49, %v2712_v56 }
 0xa8d   :  { %v2720_v48 = vpop.permute.xlu1 %2719 }
 0xa8e   :  { %v2722_v50 = vpop.permute.xlu0 %2721  ;;  %v2725_v52 = vmul.f32 %v6917_v47, %v2720_v48 }
 0xa8f   :  { %v2726_v53 = vmul.f32 %v6919_v49, %v2722_v50 }
 0xa90   :  { %2729 = vrot.lane.b32.xlu1 %v2725_v52, %s7047_s1 }
 0xa91   :  { %2731 = vrot.lane.b32.xlu0 %v2726_v53, %s7047_s1 }
 0xb02   :  { %v2730_v59 = vpop.permute.xlu1 %2729 }
 0xb03   :  { %v2732_v60 = vpop.permute.xlu0 %2731  ;;  %v7370_v61 = vadd.f32 %v2730_v59, %v2715_v57 }
 0xb04   :  { %v7372_v62 = vadd.f32 %v2732_v60, %v2716_v58 }
 0xb05   :  { %6920 = vtanh.f32 %v7370_v61  ;;  %v3266_v45 = vrot.slane %v7370_v61, 7 }
 0xb06   :  { %6922 = vtanh.f32 %v7372_v62  ;;  %v3267_v46 = vrot.slane %v7372_v62, 7 }
 0xb0f   :  { %v6921_v0 = vpop.eup %6920 }
 0xb10   :  { %v6923_v2 = vpop.eup %6922  ;;  %2741 = vrot.lane.b32.xlu1 %v6921_v0, %s7046_s0 }
 0xb11   :  { %2743 = vrot.lane.b32.xlu0 %v6923_v2, %s7046_s0 }
 0xb82   :  { %v2742_v3 = vpop.permute.xlu1 %2741 }
 0xb83   :  { %v2744_v4 = vpop.permute.xlu0 %2743  ;;  %v2747_v5 = vmul.f32 %v6917_v47, %v2742_v3 }
 0xb84   :  { %v2748_v6 = vmul.f32 %v6919_v49, %v2744_v4 }
 0xb85   :  { %v2751_v7 = vrot.slane %v2747_v5, 3 }
 0xb86   :  { %v2752_v8 = vrot.slane %v2748_v6, 2 }
 0xb88   :  { %v2753_v9 = vsel %vm1089_vm3, %v2752_v8, %v2751_v7 }
 0xb89   :  { %2754 = vrot.lane.b32.xlu1 %v2753_v9, %s7047_s1 }
 0xbfb   :  { %v2755_v10 = vpop.permute.xlu1 %2754 }
 0xbfc   :  { %v2756_v11 = vsel %vm543_vm4, %v2755_v10, 0 }
 0xbfd   :  { %v2827_v12 = vand.u32 4294901760, %v2756_v11 }
 0xbff   :  { %v2828_v13 = vsub.f32 %v2756_v11, %v2827_v12 }
 0xc01   :  { %v2829_v14 = vand.u32 4294901760, %v2828_v13 }
 0xc03   :  { %v2830_v15 = vsub.f32 %v2828_v13, %v2829_v14 }
 0xc05   :  { %v2831_v16 = vand.u32 4294901760, %v2830_v15 }
 0xc07   :  { %6104 = vmatmul.mubr.f32.vlgmr.msra.gmra.mrb[6].mxu1 %v2831_v16 }
 0xc08   :  { %6577 = vmatpush3.bf16.msra.mxu1 %v7175_v51  ;;  %6114 = vmatprep.mubr.msk.f32.mxu1 %vm7044_vm2, %v7045_v36 }
 0xc09   :  { %6578 = vmatprep.subr.bf16.mxu1 %v7043_v23 }
 0xc0c   :  { %6580 = vmatpush3.bf16.msra.mxu1 %v7181_v54 }
 0xc0d   :  { %6581 = vmatprep.subr.bf16.mxu1 %v7043_v23 }
 0xc0f   :  { %6115 = vmatmul.mubr.f32.vlgmr.msra.gmra.mrb[6].mxu1 %v2827_v12 }
 0xc10   :  { %6583 = vmatpush3.bf16.msra.mxu1 %v7101_v29  ;;  %6125 = vmatprep.mubr.msk.f32.mxu1 %vm7044_vm2, %v7045_v36 }
 0xc11   :  { %6584 = vmatprep.subr.bf16.mxu1 %v7043_v23 }
 0xc14   :  { %6586 = vmatpush3.bf16.msra.mxu1 %v7111_v35 }
 0xc15   :  { %6587 = vmatprep.subr.bf16.mxu1 %v7043_v23 }
 0xc17   :  { %6126 = vmatmul.mubr.f32.vlgmr.msra.gmra.mrb[6].mxu1 %v2828_v13 }
 0xc18   :  { %6589 = vmatpush3.bf16.msra.mxu1 %v7117_v37  ;;  %6136 = vmatprep.mubr.msk.f32.mxu1 %vm7044_vm2, %v7045_v36 }
 0xc19   :  { %6590 = vmatprep.subr.bf16.mxu1 %v7043_v23 }
 0xc1c   :  { %6592 = vmatpush3.bf16.msra.mxu1 %v7122_v38 }
 0xc1d   :  { %6593 = vmatprep.subr.bf16.mxu1 %v7043_v23 }
 0xc1f   :  { %6137 = vmatmul.mubr.f32.vlgmr.msra.gmra.mrb[6].mxu1 %v2829_v14 }
 0xc20   :  { %6595 = vmatpush3.bf16.msra.mxu1 %v7132_v41  ;;  %6147 = vmatprep.mubr.msk.f32.mxu1 %vm7044_vm2, %v7045_v36 }
 0xc21   :  { %6596 = vmatprep.subr.bf16.mxu1 %v7043_v23 }
 0xc24   :  { %6598 = vmatpush3.bf16.msra.mxu1 %v7139_v44 }
 0xc25   :  { %6599 = vmatprep.subr.bf16.mxu1 %v7043_v23 }
 0xc27   :  { %6148 = vmatmul.mubr.f32.vlgmr.msra.gmra.mrb[6].mxu1 %v2827_v12 }
 0xc28   :  { %6601 = vmatpush3.bf16.msra.mxu1 %v7117_v37  ;;  %6158 = vmatprep.mubr.msk.f32.mxu1 %vm7044_vm2, %v7045_v36 }
 0xc29   :  { %6602 = vmatprep.subr.bf16.mxu1 %v7043_v23 }
 0xc2c   :  { %6604 = vmatpush3.bf16.msra.mxu1 %v7122_v38 }
 0xc2d   :  { %6641 = vmatprep.subr.bf16.mxu1 %v7043_v23 }
 0xc2f   :  { %6159 = vmatmul.mubr.f32.vlgmr.msra.gmra.mrb[6].mxu1 %v2827_v12 }
 0xc30   :  { %6643 = vmatpush3.bf16.msra.mxu1 %v7117_v37  ;;  %6235 = vmatprep.mubr.msk.f32.mxu1 %vm7044_vm2, %v7045_v36 }
 0xc31   :  { %6644 = vmatprep.subr.bf16.mxu1 %v7043_v23 }
 0xc34   :  { %6646 = vmatpush3.bf16.msra.mxu1 %v7122_v38 }
 0xc35   :  { %6647 = vmatprep.subr.bf16.mxu1 %v7043_v23 }
 0xd02   :  { %v3239_v17 = vpop.f32.mrb[6].mxu1 }
 0xd03   :  { %v3244_v18 = vrot.slane %v3239_v17, 4  ;;  %v3245_v19 = vrot.slane %v3239_v17, 5  ;;  %v6160_v20 = vpop.f32.mrb[7].mxu1 }
 0xd05   :  { %v3248_v21 = vadd.f32 %v7197_v1, %v3244_v18  ;;  %v3249_v22 = vadd.f32 %v7195_v63, %v3245_v19 }
 0xd07   :  { %6924 = vtanh.f32 %v3248_v21  ;;  %v5504_v26 = vmul.f32 -1.442695, %v3248_v21  ;;  %v5505_v27 = vmul.f32 -1.442695, %v3249_v22 }
 0xd08   :  { %6926 = vtanh.f32 %v3249_v22 }
 0xd09   :  { %6928 = vpow2.f32 %v5504_v26 }
 0xd0a   :  { %6930 = vpow2.f32 %v5505_v27 }
 0xd11   :  { %v6925_v24 = vpop.eup %6924 }
 0xd12   :  { %v6927_v25 = vpop.eup %6926  ;;  %3274 = vrot.lane.b32.xlu0 %v6925_v24, %s7046_s0 }
 0xd13   :  { %3276 = vrot.lane.b32.xlu1 %v6927_v25, %s7046_s0  ;;  %v6929_v28 = vpop.eup %6928 }
 0xd14   :  { %v6931_v30 = vpop.eup %6930  ;;  %v3256_v31 = vadd.f32 1.0, %v6929_v28 }
 0xd15   :  { %v3257_v32 = vadd.f32 1.0, %v6931_v30 }
 0xd16   :  { %6932 = vrcp.f32 %v3256_v31 }
 0xd17   :  { %6934 = vrcp.f32 %v3257_v32 }
 0xd20   :  { %v6933_v33 = vpop.eup %6932 }
 0xd21   :  { %v6935_v39 = vpop.eup %6934  ;;  %v3270_v47 = vmul.f32 %v6933_v33, %v3266_v45 }
 0xd22   :  { %v3271_v48 = vmul.f32 %v6935_v39, %v3267_v46 }
 0xd84   :  { %v3275_v34 = vpop.permute.xlu0 %3274 }
 0xd85   :  { %v3277_v40 = vpop.permute.xlu1 %3276  ;;  %v3280_v42 = vmul.f32 %v6933_v33, %v3275_v34 }
 0xd86   :  { %v3281_v43 = vmul.f32 %v6935_v39, %v3277_v40 }
 0xd87   :  { %3284 = vrot.lane.b32.xlu0 %v3280_v42, %s7047_s1 }
 0xd88   :  { %3286 = vrot.lane.b32.xlu1 %v3281_v43, %s7047_s1 }
 0xdf9   :  { %v3285_v49 = vpop.permute.xlu0 %3284 }
 0xdfa   :  { %v3287_v50 = vpop.permute.xlu1 %3286  ;;  %v7425_v52 = vadd.f32 %v3285_v49, %v3270_v47 }
 0xdfb   :  { %v7427_v53 = vadd.f32 %v3287_v50, %v3271_v48 }
 0xdfc   :  { %6936 = vtanh.f32 %v7425_v52  ;;  %v3821_v31 = vrot.slane %v7425_v52, 7 }
 0xdfd   :  { %6938 = vtanh.f32 %v7427_v53  ;;  %v3822_v32 = vrot.slane %v7427_v53, 7 }
 0xe06   :  { %v6937_v55 = vpop.eup %6936 }
 0xe07   :  { %v6939_v56 = vpop.eup %6938  ;;  %3296 = vrot.lane.b32.xlu0 %v6937_v55, %s7046_s0 }
 0xe08   :  { %3298 = vrot.lane.b32.xlu1 %v6939_v56, %s7046_s0 }
 0xe79   :  { %v3297_v57 = vpop.permute.xlu0 %3296 }
 0xe7a   :  { %v3299_v58 = vpop.permute.xlu1 %3298  ;;  %v3302_v59 = vmul.f32 %v6933_v33, %v3297_v57 }
 0xe7b   :  { %v3303_v60 = vmul.f32 %v6935_v39, %v3299_v58 }
 0xe7c   :  { %v3306_v61 = vrot.slane %v3302_v59, 4 }
 0xe7d   :  { %v3307_v62 = vrot.slane %v3303_v60, 3 }
 0xe7f   :  { %v3308_v0 = vsel %vm1089_vm3, %v3307_v62, %v3306_v61 }
 0xe80   :  { %3309 = vrot.lane.b32.xlu0 %v3308_v0, %s7047_s1 }
 0xef2   :  { %v3310_v2 = vpop.permute.xlu0 %3309 }
 0xef3   :  { %v3311_v3 = vsel %vm543_vm4, %v3310_v2, 0 }
 0xef4   :  { %v3382_v4 = vand.u32 4294901760, %v3311_v3 }
 0xef6   :  { %v3383_v5 = vsub.f32 %v3311_v3, %v3382_v4 }
 0xef8   :  { %v3384_v6 = vand.u32 4294901760, %v3383_v5 }
 0xefa   :  { %v3385_v7 = vsub.f32 %v3383_v5, %v3384_v6 }
 0xefc   :  { %v3386_v8 = vand.u32 4294901760, %v3385_v7 }
 0xefe   :  { %6170 = vmatmul.mubr.f32.vlgmr.msra.gmra.mrb[8].mxu0 %v3386_v8 }
 0xeff   :  { %6613 = vmatpush3.bf16.msra.mxu0 %v7175_v51  ;;  %6180 = vmatprep.mubr.msk.f32.mxu0 %vm7044_vm2, %v7045_v36 }
 0xf00   :  { %6614 = vmatprep.subr.bf16.mxu0 %v7043_v23 }
 0xf03   :  { %6616 = vmatpush3.bf16.msra.mxu0 %v7181_v54 }
 0xf04   :  { %6617 = vmatprep.subr.bf16.mxu0 %v7043_v23 }
 0xf06   :  { %6181 = vmatmul.mubr.f32.vlgmr.msra.gmra.mrb[8].mxu0 %v3382_v4 }
 0xf07   :  { %6619 = vmatpush3.bf16.msra.mxu0 %v7101_v29  ;;  %6191 = vmatprep.mubr.msk.f32.mxu0 %vm7044_vm2, %v7045_v36 }
 0xf08   :  { %6620 = vmatprep.subr.bf16.mxu0 %v7043_v23 }
 0xf0b   :  { %6622 = vmatpush3.bf16.msra.mxu0 %v7111_v35 }
 0xf0c   :  { %6623 = vmatprep.subr.bf16.mxu0 %v7043_v23 }
 0xf0e   :  { %6192 = vmatmul.mubr.f32.vlgmr.msra.gmra.mrb[8].mxu0 %v3383_v5 }
 0xf0f   :  { %6625 = vmatpush3.bf16.msra.mxu0 %v7117_v37  ;;  %6202 = vmatprep.mubr.msk.f32.mxu0 %vm7044_vm2, %v7045_v36 }
 0xf10   :  { %6626 = vmatprep.subr.bf16.mxu0 %v7043_v23 }
 0xf13   :  { %6628 = vmatpush3.bf16.msra.mxu0 %v7122_v38 }
 0xf14   :  { %6629 = vmatprep.subr.bf16.mxu0 %v7043_v23 }
 0xf16   :  { %6203 = vmatmul.mubr.f32.vlgmr.msra.gmra.mrb[8].mxu0 %v3384_v6 }
 0xf17   :  { %6631 = vmatpush3.bf16.msra.mxu0 %v7132_v41  ;;  %6213 = vmatprep.mubr.msk.f32.mxu0 %vm7044_vm2, %v7045_v36 }
 0xf18   :  { %6632 = vmatprep.subr.bf16.mxu0 %v7043_v23 }
 0xf1b   :  { %6634 = vmatpush3.bf16.msra.mxu0 %v7139_v44 }
 0xf1c   :  { %6635 = vmatprep.subr.bf16.mxu0 %v7043_v23 }
 0xf1e   :  { %6214 = vmatmul.mubr.f32.vlgmr.msra.gmra.mrb[8].mxu0 %v3382_v4 }
 0xf1f   :  { %6637 = vmatpush3.bf16.msra.mxu0 %v7117_v37  ;;  %6224 = vmatprep.mubr.msk.f32.mxu0 %vm7044_vm2, %v7045_v36 }
 0xf20   :  { %6638 = vmatprep.subr.bf16.mxu0 %v7043_v23 }
 0xf23   :  { %6640 = vmatpush3.bf16.msra.mxu0 %v7122_v38 }
 0xf24   :  { %6677 = vmatprep.subr.bf16.mxu0 %v7043_v23 }
 0xf26   :  { %6225 = vmatmul.mubr.f32.vlgmr.msra.gmra.mrb[8].mxu0 %v3382_v4 }
 0xf27   :  { %6679 = vmatpush3.bf16.msra.mxu0 %v7117_v37  ;;  %6301 = vmatprep.mubr.msk.f32.mxu0 %vm7044_vm2, %v7045_v36 }
 0xf28   :  { %6680 = vmatprep.subr.bf16.mxu0 %v7043_v23 }
 0xf2b   :  { %6682 = vmatpush3.bf16.msra.mxu0 %v7122_v38 }
 0xf2c   :  { %6683 = vmatprep.subr.bf16.mxu0 %v7043_v23 }
 0xff9   :  { %v3794_v9 = vpop.f32.mrb[8].mxu0 }
 0xffa   :  { %v3799_v10 = vrot.slane %v3794_v9, 3  ;;  %v3800_v11 = vrot.slane %v3794_v9, 4  ;;  %v6226_v12 = vpop.f32.mrb[9].mxu0 }
 0xffc   :  { %v3803_v13 = vadd.f32 %v7197_v1, %v3799_v10  ;;  %v3804_v14 = vadd.f32 %v7195_v63, %v3800_v11 }
 0xffe   :  { %6940 = vtanh.f32 %v3803_v13  ;;  %v5506_v17 = vmul.f32 -1.442695, %v3803_v13  ;;  %v5507_v18 = vmul.f32 -1.442695, %v3804_v14 }
 0xfff   :  { %6942 = vtanh.f32 %v3804_v14 }
0x1000   :  { %6944 = vpow2.f32 %v5506_v17 }
0x1001   :  { %6946 = vpow2.f32 %v5507_v18 }
0x1008   :  { %v6941_v15 = vpop.eup %6940 }
0x1009   :  { %v6943_v16 = vpop.eup %6942  ;;  %3829 = vrot.lane.b32.xlu1 %v6941_v15, %s7046_s0 }
0x100a   :  { %3831 = vrot.lane.b32.xlu0 %v6943_v16, %s7046_s0  ;;  %v6945_v19 = vpop.eup %6944 }
0x100b   :  { %v6947_v20 = vpop.eup %6946  ;;  %v3811_v21 = vadd.f32 1.0, %v6945_v19 }
0x100c   :  { %v3812_v22 = vadd.f32 1.0, %v6947_v20 }
0x100d   :  { %6948 = vrcp.f32 %v3811_v21 }
0x100e   :  { %6950 = vrcp.f32 %v3812_v22 }
0x1017   :  { %v6949_v24 = vpop.eup %6948 }
0x1018   :  { %v6951_v26 = vpop.eup %6950  ;;  %v3825_v33 = vmul.f32 %v6949_v24, %v3821_v31 }
0x1019   :  { %v3826_v34 = vmul.f32 %v6951_v26, %v3822_v32 }
0x107b   :  { %v3830_v25 = vpop.permute.xlu1 %3829 }
0x107c   :  { %v3832_v27 = vpop.permute.xlu0 %3831  ;;  %v3835_v28 = vmul.f32 %v6949_v24, %v3830_v25 }
0x107d   :  { %v3836_v30 = vmul.f32 %v6951_v26, %v3832_v27 }
0x107e   :  { %3839 = vrot.lane.b32.xlu1 %v3835_v28, %s7047_s1 }
0x107f   :  { %3841 = vrot.lane.b32.xlu0 %v3836_v30, %s7047_s1 }
0x10f0   :  { %v3840_v39 = vpop.permute.xlu1 %3839 }
0x10f1   :  { %v3842_v40 = vpop.permute.xlu0 %3841  ;;  %v7480_v42 = vadd.f32 %v3840_v39, %v3825_v33 }
0x10f2   :  { %v7482_v43 = vadd.f32 %v3842_v40, %v3826_v34 }
0x10f3   :  { %6952 = vtanh.f32 %v7480_v42  ;;  %v4376_v21 = vrot.slane %v7480_v42, 7 }
0x10f4   :  { %6954 = vtanh.f32 %v7482_v43  ;;  %v4377_v22 = vrot.slane %v7482_v43, 7 }
0x10fd   :  { %v6953_v45 = vpop.eup %6952 }
0x10fe   :  { %v6955_v46 = vpop.eup %6954  ;;  %3851 = vrot.lane.b32.xlu1 %v6953_v45, %s7046_s0 }
0x10ff   :  { %3853 = vrot.lane.b32.xlu0 %v6955_v46, %s7046_s0 }
0x1170   :  { %v3852_v47 = vpop.permute.xlu1 %3851 }
0x1171   :  { %v3854_v48 = vpop.permute.xlu0 %3853  ;;  %v3857_v49 = vmul.f32 %v6949_v24, %v3852_v47 }
0x1172   :  { %v3858_v50 = vmul.f32 %v6951_v26, %v3854_v48 }
0x1173   :  { %v3861_v52 = vrot.slane %v3857_v49, 5 }
0x1174   :  { %v3862_v53 = vrot.slane %v3858_v50, 4 }
0x1176   :  { %v3863_v55 = vsel %vm1089_vm3, %v3862_v53, %v3861_v52 }
0x1177   :  { %3864 = vrot.lane.b32.xlu1 %v3863_v55, %s7047_s1 }
0x11e9   :  { %v3865_v56 = vpop.permute.xlu1 %3864 }
0x11ea   :  { %v3866_v57 = vsel %vm543_vm4, %v3865_v56, 0 }
0x11eb   :  { %v3937_v58 = vand.u32 4294901760, %v3866_v57 }
0x11ed   :  { %v3938_v59 = vsub.f32 %v3866_v57, %v3937_v58 }
0x11ef   :  { %v3939_v60 = vand.u32 4294901760, %v3938_v59 }
0x11f1   :  { %v3940_v61 = vsub.f32 %v3938_v59, %v3939_v60 }
0x11f3   :  { %v3941_v62 = vand.u32 4294901760, %v3940_v61 }
0x11f5   :  { %6236 = vmatmul.mubr.f32.vlgmr.msra.gmra.mrb[8].mxu1 %v3941_v62 }
0x11f6   :  { %6649 = vmatpush3.bf16.msra.mxu1 %v7175_v51  ;;  %6246 = vmatprep.mubr.msk.f32.mxu1 %vm7044_vm2, %v7045_v36 }
0x11f7   :  { %6650 = vmatprep.subr.bf16.mxu1 %v7043_v23 }
0x11fa   :  { %6652 = vmatpush3.bf16.msra.mxu1 %v7181_v54 }
0x11fb   :  { %6653 = vmatprep.subr.bf16.mxu1 %v7043_v23 }
0x11fd   :  { %6247 = vmatmul.mubr.f32.vlgmr.msra.gmra.mrb[8].mxu1 %v3937_v58 }
0x11fe   :  { %6655 = vmatpush3.bf16.msra.mxu1 %v7101_v29  ;;  %6257 = vmatprep.mubr.msk.f32.mxu1 %vm7044_vm2, %v7045_v36 }
0x11ff   :  { %6656 = vmatprep.subr.bf16.mxu1 %v7043_v23 }
0x1202   :  { %6658 = vmatpush3.bf16.msra.mxu1 %v7111_v35 }
0x1203   :  { %6659 = vmatprep.subr.bf16.mxu1 %v7043_v23 }
0x1205   :  { %6258 = vmatmul.mubr.f32.vlgmr.msra.gmra.mrb[8].mxu1 %v3938_v59 }
0x1206   :  { %6661 = vmatpush3.bf16.msra.mxu1 %v7117_v37  ;;  %6268 = vmatprep.mubr.msk.f32.mxu1 %vm7044_vm2, %v7045_v36 }
0x1207   :  { %6662 = vmatprep.subr.bf16.mxu1 %v7043_v23 }
0x120a   :  { %6664 = vmatpush3.bf16.msra.mxu1 %v7122_v38 }
0x120b   :  { %6665 = vmatprep.subr.bf16.mxu1 %v7043_v23 }
0x120d   :  { %6269 = vmatmul.mubr.f32.vlgmr.msra.gmra.mrb[8].mxu1 %v3939_v60 }
0x120e   :  { %6667 = vmatpush3.bf16.msra.mxu1 %v7132_v41  ;;  %6279 = vmatprep.mubr.msk.f32.mxu1 %vm7044_vm2, %v7045_v36 }
0x120f   :  { %6668 = vmatprep.subr.bf16.mxu1 %v7043_v23 }
0x1212   :  { %6670 = vmatpush3.bf16.msra.mxu1 %v7139_v44 }
0x1213   :  { %6671 = vmatprep.subr.bf16.mxu1 %v7043_v23 }
0x1215   :  { %6280 = vmatmul.mubr.f32.vlgmr.msra.gmra.mrb[8].mxu1 %v3937_v58 }
0x1216   :  { %6673 = vmatpush3.bf16.msra.mxu1 %v7117_v37  ;;  %6290 = vmatprep.mubr.msk.f32.mxu1 %vm7044_vm2, %v7045_v36 }
0x1217   :  { %6674 = vmatprep.subr.bf16.mxu1 %v7043_v23 }
0x121a   :  { %6676 = vmatpush3.bf16.msra.mxu1 %v7122_v38 }
0x121b   :  { %6713 = vmatprep.subr.bf16.mxu1 %v7043_v23 }
0x121d   :  { %6291 = vmatmul.mubr.f32.vlgmr.msra.gmra.mrb[8].mxu1 %v3937_v58 }
0x121e   :  { %6367 = vmatprep.mubr.msk.f32.mxu1 %vm7044_vm2, %v7045_v36 }
0x12f0   :  { %v4349_v0 = vpop.f32.mrb[8].mxu1 }
0x12f1   :  { %v4354_v2 = vrot.slane %v4349_v0, 2  ;;  %v4355_v3 = vrot.slane %v4349_v0, 3  ;;  %v6292_v4 = vpop.f32.mrb[9].mxu1 }
0x12f3   :  { %v4358_v5 = vadd.f32 %v7197_v1, %v4354_v2  ;;  %v4359_v6 = vadd.f32 %v7195_v63, %v4355_v3 }
0x12f5   :  { %6956 = vtanh.f32 %v4358_v5  ;;  %v5508_v9 = vmul.f32 -1.442695, %v4358_v5  ;;  %v5509_v10 = vmul.f32 -1.442695, %v4359_v6 }
0x12f6   :  { %6958 = vtanh.f32 %v4359_v6 }
0x12f7   :  { %6960 = vpow2.f32 %v5508_v9 }
0x12f8   :  { %6962 = vpow2.f32 %v5509_v10 }
0x12ff   :  { %v6957_v7 = vpop.eup %6956 }
0x1300   :  { %v6959_v8 = vpop.eup %6958  ;;  %4384 = vrot.lane.b32.xlu0 %v6957_v7, %s7046_s0 }
0x1301   :  { %4386 = vrot.lane.b32.xlu1 %v6959_v8, %s7046_s0  ;;  %v6961_v11 = vpop.eup %6960 }
0x1302   :  { %v6963_v12 = vpop.eup %6962  ;;  %v4366_v13 = vadd.f32 1.0, %v6961_v11 }
0x1303   :  { %v4367_v14 = vadd.f32 1.0, %v6963_v12 }
0x1304   :  { %6964 = vrcp.f32 %v4366_v13  ;;  %v32_v13 = vld [vmem:[#allocation2 + $0x30] sm:$0xff] }
0x1305   :  { %6966 = vrcp.f32 %v4367_v14  ;;  %v33_v14 = vld [vmem:[#allocation2 + $0x38] sm:$0xff] }
0x130e   :  { %v6965_v15 = vpop.eup %6964 }
0x130f   :  { %v6967_v17 = vpop.eup %6966  ;;  %v4380_v24 = vmul.f32 %v6965_v15, %v4376_v21  ;;  %v35_v21 = vld [vmem:[#allocation2 + $0x48] sm:$0xff] }
0x1310   :  { %v4381_v25 = vmul.f32 %v6967_v17, %v4377_v22 }
0x1372   :  { %v4385_v16 = vpop.permute.xlu0 %4384 }
0x1373   :  { %v4387_v18 = vpop.permute.xlu1 %4386  ;;  %v4390_v19 = vmul.f32 %v6965_v15, %v4385_v16  ;;  %v4986_v16 = vand.u32 4294901760, %v33_v14 }
0x1374   :  { %v4391_v20 = vmul.f32 %v6967_v17, %v4387_v18 }
0x1375   :  { %4394 = vrot.lane.b32.xlu0 %v4390_v19, %s7047_s1  ;;  %v5070_v19 = vsub.f32 %v33_v14, %v4986_v16 }
0x1376   :  { %4396 = vrot.lane.b32.xlu1 %v4391_v20, %s7047_s1  ;;  %v34_v20 = vld [vmem:[#allocation2 + $0x40] sm:$0xff] }
0x1377   :  { %v4989_v22 = vand.u32 4294901760, %v34_v20 }
0x13e7   :  { %v4395_v26 = vpop.permute.xlu0 %4394 }
0x13e8   :  { %v4397_v27 = vpop.permute.xlu1 %4396  ;;  %v7531_v28 = vadd.f32 %v4395_v26, %v4380_v24  ;;  %v4992_v24 = vand.u32 4294901760, %v35_v21  ;;  %v5071_v26 = vand.u32 4294901760, %v5070_v19 }
0x13e9   :  { %v7533_v30 = vadd.f32 %v4397_v27, %v4381_v25 }
0x13ea   :  { %6968 = vtanh.f32 %v7531_v28  ;;  %v4931_v3 = vrot.slane %v7531_v28, 7  ;;  %v6717_v28 = vpack.c.bf16 %v4992_v24, %v4989_v22 }
0x13eb   :  { %6970 = vtanh.f32 %v7533_v30  ;;  %v4932_v4 = vrot.slane %v7533_v30, 7  ;;  %v5077_v30 = vsub.f32 %v34_v20, %v4989_v22 }
0x13f4   :  { %v6969_v31 = vpop.eup %6968 }
0x13f5   :  { %v6971_v32 = vpop.eup %6970  ;;  %4406 = vrot.lane.b32.xlu0 %v6969_v31, %s7046_s0  ;;  %v5084_v31 = vsub.f32 %v35_v21, %v4992_v24 }
0x13f6   :  { %4408 = vrot.lane.b32.xlu1 %v6971_v32, %s7046_s0 }
0x1467   :  { %v4407_v33 = vpop.permute.xlu0 %4406 }
0x1468   :  { %v4409_v34 = vpop.permute.xlu1 %4408  ;;  %v4412_v39 = vmul.f32 %v6965_v15, %v4407_v33  ;;  %v4983_v15 = vand.u32 4294901760, %v32_v13 }
0x1469   :  { %v4413_v40 = vmul.f32 %v6967_v17, %v4409_v34 }
0x146a   :  { %v4416_v42 = vrot.slane %v4412_v39, 6  ;;  %v7581_v17 = vpack.c.bf16 %v4986_v16, %v4983_v15  ;;  %v5063_v18 = vsub.f32 %v32_v13, %v4983_v15  ;;  %v5072_v39 = vsub.f32 %v5070_v19, %v5071_v26 }
0x146b   :  { %v4417_v43 = vrot.slane %v4413_v40, 5 }
0x146c   :  { %6715 = vmatpush3.bf16.msra.mxu1 %v7581_v17  ;;  %v5064_v25 = vand.u32 4294901760, %v5063_v18 }
0x146d   :  { %v4418_v45 = vsel %vm1089_vm3, %v4417_v43, %v4416_v42  ;;  %6716 = vmatprep.subr.bf16.mxu1 %v7043_v23  ;;  %v5078_v43 = vand.u32 4294901760, %v5077_v30 }
0x146e   :  { %4419 = vrot.lane.b32.xlu0 %v4418_v45, %s7047_s1  ;;  %v5065_v32 = vsub.f32 %v5063_v18, %v5064_v25  ;;  %v5085_v45 = vand.u32 4294901760, %v5084_v31 }
0x1470   :  { %6718 = vmatpush3.bf16.msra.mxu1 %v6717_v28  ;;  %v5066_v42 = vand.u32 4294901760, %v5065_v32 }
0x1471   :  { %6719 = vmatprep.subr.bf16.mxu1 %v7043_v23 }
0x14e0   :  { %v4420_v46 = vpop.permute.xlu0 %4419 }
0x14e1   :  { %v4421_v47 = vsel %vm543_vm4, %v4420_v46, 0 }
0x14e2   :  { %v4492_v48 = vand.u32 4294901760, %v4421_v47 }
0x14e4   :  { %v4493_v49 = vsub.f32 %v4421_v47, %v4492_v48  ;;  %v5073_v47 = vand.u32 4294901760, %v5072_v39 }
0x14e6   :  { %v4494_v50 = vand.u32 4294901760, %v4493_v49 }
0x14e8   :  { %v4495_v52 = vsub.f32 %v4493_v49, %v4494_v50 }
0x14ea   :  { %v4496_v53 = vand.u32 4294901760, %v4495_v52  ;;  %v6720_v52 = vpack.c.bf16 %v5073_v47, %v5066_v42 }
0x14ec   :  { %6302 = vmatmul.mubr.f32.vlgmr.msra.gmra.mrb[10].mxu0 %v4496_v53 }
0x14ed   :  { %6685 = vmatpush3.bf16.msra.mxu0 %v7175_v51  ;;  %6312 = vmatprep.mubr.msk.f32.mxu0 %vm7044_vm2, %v7045_v36 }
0x14ee   :  { %6686 = vmatprep.subr.bf16.mxu0 %v7043_v23 }
0x14f1   :  { %6688 = vmatpush3.bf16.msra.mxu0 %v7181_v54 }
0x14f2   :  { %6689 = vmatprep.subr.bf16.mxu0 %v7043_v23 }
0x14f4   :  { %6313 = vmatmul.mubr.f32.vlgmr.msra.gmra.mrb[10].mxu0 %v4492_v48 }
0x14f5   :  { %6691 = vmatpush3.bf16.msra.mxu0 %v7101_v29  ;;  %6323 = vmatprep.mubr.msk.f32.mxu0 %vm7044_vm2, %v7045_v36 }
0x14f6   :  { %6692 = vmatprep.subr.bf16.mxu0 %v7043_v23 }
0x14f9   :  { %6694 = vmatpush3.bf16.msra.mxu0 %v7111_v35 }
0x14fa   :  { %6695 = vmatprep.subr.bf16.mxu0 %v7043_v23 }
0x14fc   :  { %6324 = vmatmul.mubr.f32.vlgmr.msra.gmra.mrb[10].mxu0 %v4493_v49  ;;  %v5079_v49 = vsub.f32 %v5077_v30, %v5078_v43 }
0x14fd   :  { %6697 = vmatpush3.bf16.msra.mxu0 %v7117_v37  ;;  %6334 = vmatprep.mubr.msk.f32.mxu0 %vm7044_vm2, %v7045_v36 }
0x14fe   :  { %6698 = vmatprep.subr.bf16.mxu0 %v7043_v23 }
0x1501   :  { %6700 = vmatpush3.bf16.msra.mxu0 %v7122_v38 }
0x1502   :  { %6701 = vmatprep.subr.bf16.mxu0 %v7043_v23 }
0x1504   :  { %6335 = vmatmul.mubr.f32.vlgmr.msra.gmra.mrb[10].mxu0 %v4494_v50  ;;  %v5086_v50 = vsub.f32 %v5084_v31, %v5085_v45 }
0x1505   :  { %6703 = vmatpush3.bf16.msra.mxu0 %v7132_v41  ;;  %6345 = vmatprep.mubr.msk.f32.mxu0 %vm7044_vm2, %v7045_v36 }
0x1506   :  { %6704 = vmatprep.subr.bf16.mxu0 %v7043_v23 }
0x1509   :  { %6706 = vmatpush3.bf16.msra.mxu0 %v7139_v44 }
0x150a   :  { %6707 = vmatprep.subr.bf16.mxu0 %v7043_v23 }
0x150c   :  { %6346 = vmatmul.mubr.f32.vlgmr.msra.gmra.mrb[10].mxu0 %v4492_v48 }
0x150d   :  { %6709 = vmatpush3.bf16.msra.mxu0 %v7117_v37  ;;  %6356 = vmatprep.mubr.msk.f32.mxu0 %vm7044_vm2, %v7045_v36 }
0x150e   :  { %6710 = vmatprep.subr.bf16.mxu0 %v7043_v23 }
0x1511   :  { %6712 = vmatpush3.bf16.msra.mxu0 %v7122_v38 }
0x1514   :  { %6357 = vmatmul.mubr.f32.vlgmr.msra.gmra.mrb[10].mxu0 %v4492_v48 }
0x15e7   :  { %v4904_v29 = vpop.f32.mrb[10].mxu0 }
0x15e8   :  { %v4909_v35 = vrot.slane %v4904_v29, 1  ;;  %v4910_v41 = vrot.slane %v4904_v29, 2  ;;  %v6358_v51 = vpop.f32.mrb[11].mxu0  ;;  %v5080_v29 = vand.u32 4294901760, %v5079_v49 }
0x15e9   :  { %v6726_v51 = vpack.c.bf16 %v5070_v19, %v5063_v18 }
0x15ea   :  { %v4913_v54 = vadd.f32 %v7197_v1, %v4909_v35  ;;  %v4914_v44 = vadd.f32 %v7195_v63, %v4910_v41  ;;  %v5087_v35 = vand.u32 4294901760, %v5086_v50 }
0x15ec   :  { %6972 = vtanh.f32 %v4913_v54  ;;  %v5510_v56 = vmul.f32 -1.442695, %v4913_v54  ;;  %v5511_v57 = vmul.f32 -1.442695, %v4914_v44  ;;  %v6723_v41 = vpack.c.bf16 %v5087_v35, %v5080_v29 }
0x15ed   :  { %6974 = vtanh.f32 %v4914_v44  ;;  %v6729_v54 = vpack.c.bf16 %v5084_v31, %v5077_v30  ;;  %v6738_v44 = vpack.c.bf16 %v5071_v26, %v5064_v25 }
0x15ee   :  { %6976 = vpow2.f32 %v5510_v56 }
0x15ef   :  { %6978 = vpow2.f32 %v5511_v57 }
0x15f6   :  { %v6973_v55 = vpop.eup %6972 }
0x15f7   :  { %v6975_v37 = vpop.eup %6974  ;;  %4939 = vrot.lane.b32.xlu1 %v6973_v55, %s7046_s0  ;;  %v6741_v55 = vpack.c.bf16 %v5085_v45, %v5078_v43 }
0x15f8   :  { %4941 = vrot.lane.b32.xlu0 %v6975_v37, %s7046_s0  ;;  %v6977_v38 = vpop.eup %6976 }
0x15f9   :  { %v6979_v58 = vpop.eup %6978  ;;  %v4921_v59 = vadd.f32 1.0, %v6977_v38 }
0x15fa   :  { %v4922_v60 = vadd.f32 1.0, %v6979_v58 }
0x15fb   :  { %6980 = vrcp.f32 %v4921_v59 }
0x15fc   :  { %6982 = vrcp.f32 %v4922_v60 }
0x1605   :  { %v6981_v1 = vpop.eup %6980 }
0x1606   :  { %v6983_v61 = vpop.eup %6982  ;;  %v4935_v5 = vmul.f32 %v6981_v1, %v4931_v3 }
0x1607   :  { %v4936_v6 = vmul.f32 %v6983_v61, %v4932_v4 }
0x1669   :  { %v4940_v63 = vpop.permute.xlu1 %4939 }
0x166a   :  { %v4942_v62 = vpop.permute.xlu0 %4941  ;;  %v4945_v0 = vmul.f32 %v6981_v1, %v4940_v63 }
0x166b   :  { %v4946_v2 = vmul.f32 %v6983_v61, %v4942_v62 }
0x166c   :  { %4949 = vrot.lane.b32.xlu1 %v4945_v0, %s7047_s1 }
0x166d   :  { %4951 = vrot.lane.b32.xlu0 %v4946_v2, %s7047_s1 }
0x16de   :  { %v4950_v7 = vpop.permute.xlu1 %4949 }
0x16df   :  { %v4952_v8 = vpop.permute.xlu0 %4951  ;;  %v4955_v9 = vadd.f32 %v4950_v7, %v4935_v5 }
0x16e0   :  { %v4956_v10 = vadd.f32 %v4952_v8, %v4936_v6 }
0x16e1   :  { %6984 = vtanh.f32 %v4955_v9 }
0x16e2   :  { %6986 = vtanh.f32 %v4956_v10 }
0x16eb   :  { %v6985_v11 = vpop.eup %6984 }
0x16ec   :  { %v6987_v12 = vpop.eup %6986  ;;  %4961 = vrot.lane.b32.xlu1 %v6985_v11, %s7046_s0 }
0x16ed   :  { %4963 = vrot.lane.b32.xlu0 %v6987_v12, %s7046_s0 }
0x175e   :  { %v4962_v27 = vpop.permute.xlu1 %4961 }
0x175f   :  { %v4964_v33 = vpop.permute.xlu0 %4963  ;;  %v4967_v34 = vmul.f32 %v6981_v1, %v4962_v27  ;;  %v5512_v1 = vld [vmem:[#allocation2 + $0x50] ss:$0 sm:$0xff] }
0x1760   :  { %v4968_v40 = vmul.f32 %v6983_v61, %v4964_v33 }
0x1761   :  { %v4975_v46 = vrot.slane %v4967_v34, 7 }
0x1762   :  { %v4976_v48 = vrot.slane %v4968_v40, 6 }
0x1764   :  { %v4977_v53 = vsel %vm1089_vm3, %v4976_v48, %v4975_v46 }
0x1765   :  { %4978 = vrot.lane.b32.xlu1 %v4977_v53, %s7047_s1 }
0x17d7   :  { %v4979_v37 = vpop.permute.xlu1 %4978 }
0x17d8   :  { %v4980_v56 = vsel %vm543_vm4, %v4979_v37, 0 }
0x17d9   :  { %v5051_v57 = vand.u32 4294901760, %v4980_v56 }
0x17db   :  { %v5052_v38 = vsub.f32 %v4980_v56, %v5051_v57 }
0x17dd   :  { %v5053_v58 = vand.u32 4294901760, %v5052_v38 }
0x17df   :  { %v5054_v59 = vsub.f32 %v5052_v38, %v5053_v58 }
0x17e1   :  { %v5055_v60 = vand.u32 4294901760, %v5054_v59 }
0x17e3   :  { %6368 = vmatmul.mubr.f32.vlgmr.msra.gmra.mrb[10].mxu1 %v5055_v60 }
0x17e4   :  { %6721 = vmatpush3.bf16.msra.mxu1 %v6720_v52  ;;  %6378 = vmatprep.mubr.msk.f32.mxu1 %vm7044_vm2, %v7045_v36 }
0x17e5   :  { %6722 = vmatprep.subr.bf16.mxu1 %v7043_v23 }
0x17e8   :  { %6724 = vmatpush3.bf16.msra.mxu1 %v6723_v41 }
0x17e9   :  { %6725 = vmatprep.subr.bf16.mxu1 %v7043_v23 }
0x17eb   :  { %6379 = vmatmul.mubr.f32.vlgmr.msra.gmra.mrb[10].mxu1 %v5051_v57 }
0x17ec   :  { %6727 = vmatpush3.bf16.msra.mxu1 %v6726_v51  ;;  %6389 = vmatprep.mubr.msk.f32.mxu1 %vm7044_vm2, %v7045_v36 }
0x17ed   :  { %6728 = vmatprep.subr.bf16.mxu1 %v7043_v23 }
0x17f0   :  { %6730 = vmatpush3.bf16.msra.mxu1 %v6729_v54 }
0x17f1   :  { %6731 = vmatprep.subr.bf16.mxu1 %v7043_v23 }
0x17f3   :  { %6390 = vmatmul.mubr.f32.vlgmr.msra.gmra.mrb[10].mxu1 %v5052_v38 }
0x17f4   :  { %6733 = vmatpush3.bf16.msra.mxu1 %v7581_v17  ;;  %6400 = vmatprep.mubr.msk.f32.mxu1 %vm7044_vm2, %v7045_v36 }
0x17f5   :  { %6734 = vmatprep.subr.bf16.mxu1 %v7043_v23 }
0x17f8   :  { %6736 = vmatpush3.bf16.msra.mxu1 %v6717_v28 }
0x17f9   :  { %6737 = vmatprep.subr.bf16.mxu1 %v7043_v23 }
0x17fb   :  { %6401 = vmatmul.mubr.f32.vlgmr.msra.gmra.mrb[10].mxu1 %v5053_v58 }
0x17fc   :  { %6739 = vmatpush3.bf16.msra.mxu1 %v6738_v44  ;;  %6411 = vmatprep.mubr.msk.f32.mxu1 %vm7044_vm2, %v7045_v36 }
0x17fd   :  { %6740 = vmatprep.subr.bf16.mxu1 %v7043_v23 }
0x1800   :  { %6742 = vmatpush3.bf16.msra.mxu1 %v6741_v55 }
0x1801   :  { %6743 = vmatprep.subr.bf16.mxu1 %v7043_v23 }
0x1803   :  { %6412 = vmatmul.mubr.f32.vlgmr.msra.gmra.mrb[10].mxu1 %v5051_v57 }
0x1804   :  { %6745 = vmatpush3.bf16.msra.mxu1 %v7581_v17  ;;  %6422 = vmatprep.mubr.msk.f32.mxu1 %vm7044_vm2, %v7045_v36 }
0x1805   :  { %6746 = vmatprep.subr.bf16.mxu1 %v7043_v23 }
0x1808   :  { %6748 = vmatpush3.bf16.msra.mxu1 %v6717_v28 }
0x180b   :  { %6423 = vmatmul.mubr.f32.vlgmr.msra.gmra.mrb[10].mxu1 %v5051_v57 }
0x18de   :  { %v5463_v63 = vpop.f32.mrb[10].mxu1 }
0x18df   :  { %v6754_v61 = vadd.f32 %v5512_v1, %v5463_v63  ;;  %v6424_v62 = vpop.f32.mrb[11].mxu1 }
0x18e1   :  { %v5468_v0 = vsel %vm5467_vm5, %v6754_v61, -inf }
0x18e2   :  { %5469 = vmax.xlane.f32.xlu0 %v5468_v0 }
0x196f   :  { %v5470_v2 = vpop.xlane.xlu0 %5469 }
0x1970   :  { %v5471_v3 = vsub.f32 %v6754_v61, %v5470_v2 }
0x1972   :  { %v5472_v4 = vmul.f32 1.442695, %v5471_v3 }
0x1974   :  { %6988 = vpow2.f32 %v5472_v4 }
0x197e   :  { %v6989_v5 = vpop.eup %6988 }
0x197f   :  { %v5474_v6 = vsel %vm5467_vm5, %v6989_v5, 0.0 }
0x1980   :  { %5475 = vadd.xlane.f32.xlu1 %v5474_v6 }
0x1a0d   :  { %v5476_v36 = vpop.xlane.xlu1 %5475 }
0x1a0e   :  { %6990 = vrcp.f32 %v5476_v36 }
0x1a18   :  { %v6991_v23 = vpop.eup %6990 }
0x1a19   :  { %v5478_v7 = vmul.f32 %v6991_v23, %v6989_v5 }
0x1a1b   :  { %5479 = vst.msk [vmem:[#allocation5] sm:$0x3] %vm5467_vm5, %v5478_v7 }
0x1a1c   :  { %7025 = shalt.err (!%p7022_p12)
}
0x1a1d   :  { %s7026_s4 = scalar_lea.hbm %s7627_s2, 32 }
0x1a1e   :  { %p7027_p13 = scmp.ne.s32.totalorder %s7627_s2, %s7026_s4  ;;  %p7030_p0 = scmp.lt.u32.totalorder %s7026_s4, %s7627_s2 }
0x1a20   :  { %p7032_p1 = pnand %p7030_p0, %p7027_p13 }
0x1a22   :  { %7035 = shalt.err (!%p7032_p1)
}
0x1a23   :  { %5489 = dma.vmem_to_hbm [thread:$0]  %s5487_s28, 32, %s7627_s2, [#allocation4]  }
0x1a24   :  { %7038 = dma.done.wait [#allocation4], 32  }
0x1a25   :  { %7039 = vsyncadd [#allocation4], 4294967264 }
0x1a26   :  { %5493 = vsyncpa [#allocation3], 1 }
0x1a27   :  { %5494 = vsyncpa [#allocation4], 1 }

</bundles_post_ra>
